<compile_context>
chip_gen: v6e
topology: v6e:2x2x1
jax: 0.10.0
libtpu: 0.0.40
codegen_flags: <defaults>
</compile_context>

<pallas_src>
import functools

import jax
import jax.numpy as jnp
import numpy as np
from jax.experimental import pallas as pl
from jax.experimental.pallas import tpu as pltpu


def _attn_kernel(q_ref, k_ref, v_ref,
                 wq_ref, wk_ref, wv_ref,
                 bq_ref, bk_ref, bv_ref,
                 *rest,
                 head, d_q, use_mask, batched_heads, exp_dtype):
    if use_mask:
        mask_ref, o_ref = rest
    else:
        (o_ref,) = rest
        mask_ref = None

    bt, nq, d_model = q_ref.shape
    nk = k_ref.shape[1]
    cdt = wq_ref.dtype                          # MXU compute dtype (bf16)

    # ---- QKV projections: fold (batch_tile, seq) onto the MXU M axis. ----
    q2 = q_ref[...].reshape(bt * nq, d_model)
    k2 = k_ref[...].reshape(bt * nk, d_model)
    v2 = v_ref[...].reshape(bt * nk, d_model)

    # f32 accumulation + f32 bias add, then a single cast to bf16 so only the
    # narrow copies stay live (1/sqrt(d_q) is pre-folded into wq / bq).
    q = (jnp.dot(q2, wq_ref[...], preferred_element_type=jnp.float32)
         + bq_ref[...]).astype(cdt)
    k = (jnp.dot(k2, wk_ref[...], preferred_element_type=jnp.float32)
         + bk_ref[...]).astype(cdt)
    v = (jnp.dot(v2, wv_ref[...], preferred_element_type=jnp.float32)
         + bv_ref[...]).astype(cdt)

    if batched_heads:
        # One head-batched contraction: a single long MXU stream + one softmax.
        q4 = q.reshape(bt, nq, head, d_q)
        k4 = k.reshape(bt, nk, head, d_q)
        v4 = v.reshape(bt, nk, head, d_q)
        s = jnp.einsum('bqhd,bkhd->bhqk', q4, k4,
                       preferred_element_type=jnp.float32)      # (bt,h,nq,nk)
        if use_mask:
            m = mask_ref[...].reshape(bt, 1, 1, nk)
            s = jnp.where(m == 0, jnp.float32(-10000.0), s)
        s = s - jnp.max(s, axis=-1, keepdims=True)
        p32 = jnp.exp(s.astype(exp_dtype)).astype(jnp.float32)  # EUP (bf16 on v6e+)
        inv = pl.reciprocal(jnp.sum(p32, axis=-1, keepdims=True), approx=True)
        pn = (p32 * inv).astype(cdt)
        o = jnp.einsum('bhqk,bkhd->bqhd', pn, v4,
                       preferred_element_type=jnp.float32)      # (bt,nq,h,d_q)
        o = o.reshape(bt, nq, head * d_q)
    else:
        # Compatibility fallback: static per-head lane slices (known-good path).
        q3 = q.reshape(bt, nq, d_model)
        k3 = k.reshape(bt, nk, d_model)
        v3 = v.reshape(bt, nk, d_model)
        m3 = mask_ref[...].reshape(bt, 1, nk) if use_mask else None
        outs = []
        for h in range(head):
            sl = slice(h * d_q, (h + 1) * d_q)
            s = jnp.einsum('bqd,bkd->bqk', q3[:, :, sl], k3[:, :, sl],
                           preferred_element_type=jnp.float32)
            if use_mask:
                s = jnp.where(m3 == 0, jnp.float32(-10000.0), s)
            s = s - jnp.max(s, axis=-1, keepdims=True)
            p32 = jnp.exp(s.astype(exp_dtype)).astype(jnp.float32)
            inv = pl.reciprocal(jnp.sum(p32, axis=-1, keepdims=True),
                                approx=True)
            outs.append(jnp.einsum('bqk,bkd->bqd', (p32 * inv).astype(cdt),
                                   v3[:, :, sl],
                                   preferred_element_type=jnp.float32))
        o = jnp.concatenate(outs, axis=-1)

    # Single store; (bt, 1, nq*d_model) slab when the output block is flattened
    # for lane density, (bt, nq, d_model) otherwise.
    o_ref[...] = o.reshape(o_ref.shape).astype(o_ref.dtype)


def _build_attention_call(b_s, nq, nk, d_model, head, b_tile, *,
                          act_dtype, w_dtype, out_dtype, vmem_cap, use_mask,
                          batched_heads, flat_out, single_buffer_weights,
                          exp_dtype):
    d_q = d_model // head
    kernel = functools.partial(_attn_kernel, head=head, d_q=d_q,
                               use_mask=use_mask, batched_heads=batched_heads,
                               exp_dtype=exp_dtype)

    const_kwargs = {}
    if single_buffer_weights:
        # Grid-invariant weights/biases: one VMEM copy, no double buffering.
        const_kwargs = dict(pipeline_mode=pl.Buffered(1))
    # TODO(synk): when 3 * d_model^2 * itemsize exceeds ~half the VMEM cap
    # (large d_model on v7x's 64 MiB), stream weight tiles from HBM
    # (memory_space=pl.ANY + make_async_copy) or add a d_model grid axis
    # instead of keeping all three projection matrices resident.
    w_spec = pl.BlockSpec((d_model, d_model), lambda b: (0, 0), **const_kwargs)
    bias_spec = pl.BlockSpec((1, d_model), lambda b: (0, 0), **const_kwargs)

    in_specs = [
        pl.BlockSpec((b_tile, nq, d_model), lambda b: (b, 0, 0)),
        pl.BlockSpec((b_tile, nk, d_model), lambda b: (b, 0, 0)),
        pl.BlockSpec((b_tile, nk, d_model), lambda b: (b, 0, 0)),
        w_spec, w_spec, w_spec,
        bias_spec, bias_spec, bias_spec,
    ]
    if use_mask:
        in_specs.append(pl.BlockSpec((b_tile, nk), lambda b: (b, 0)))

    if flat_out:
        # Lane-dense output slab (last dim nq*d_model >= 128) instead of a
        # masked sub-128-lane d_model store; wrapper reshapes back.
        out_shape = jax.ShapeDtypeStruct((b_s, 1, nq * d_model), out_dtype)
        out_spec = pl.BlockSpec((b_tile, 1, nq * d_model), lambda b: (b, 0, 0))
    else:
        out_shape = jax.ShapeDtypeStruct((b_s, nq, d_model), out_dtype)
        out_spec = pl.BlockSpec((b_tile, nq, d_model), lambda b: (b, 0, 0))

    itemsize_a = jnp.dtype(act_dtype).itemsize
    itemsize_w = jnp.dtype(w_dtype).itemsize
    itemsize_o = jnp.dtype(out_dtype).itemsize

    rows_q, rows_kv = b_tile * nq, b_tile * nk
    act_bytes = (rows_q + 2 * rows_kv) * d_model * itemsize_a
    out_bytes = rows_q * d_model * itemsize_o
    w_bytes = 3 * d_model * d_model * itemsize_w + 3 * d_model * 4
    # Live intermediates: f32 projection accumulators + bf16 copies + the
    # all-heads score/probability tiles + f32 merged output.
    interm = ((4 + itemsize_a) * (rows_q + 2 * rows_kv) * d_model
              + 3 * 4 * b_tile * head * nq * nk
              + 4 * rows_q * d_model)
    w_buf = 1 if single_buffer_weights else 2
    # Generation-aware clamp: ~100 MiB budget on 128 MiB chips (v5e/v6e),
    # <= 48 MiB on v7x's 64 MiB physical VMEM.
    cap = (100 << 20) if vmem_cap >= (96 << 20) else min(48 << 20,
                                                         (vmem_cap * 3) // 4)
    vmem_limit = int(min(cap, max(8 << 20,
                                  2 * (act_bytes + out_bytes)
                                  + w_buf * w_bytes + interm)))

    flops = (2 * b_s * d_model * d_model * (nq + 2 * nk)   # projections
             + 4 * b_s * head * nq * nk * d_q)              # QK^T and PV
    cost = pl.CostEstimate(
        flops=int(flops),
        transcendentals=int(b_s * head * nq * nk),
        bytes_accessed=int(b_s * (nq + 2 * nk) * d_model * itemsize_a
                           + w_bytes + b_s * nq * d_model * itemsize_o),
    )

    return pl.pallas_call(
        kernel,
        out_shape=out_shape,
        grid=(b_s // b_tile,),
        in_specs=in_specs,
        out_specs=out_spec,
        compiler_params=pltpu.CompilerParams(
            dimension_semantics=("parallel",),
            vmem_limit_bytes=vmem_limit),
        cost_estimate=cost,
    )


def _vmem_capacity_bytes():
    try:
        return int(pltpu.get_tpu_info().vmem_capacity_bytes)
    except Exception:
        return 64 << 20   # conservative (v7x-sized) default


def _supports_bf16_eup():
    try:
        kind = jax.devices()[0].device_kind.lower()
    except Exception:
        return False
    # v2-v5 have no bf16 VPU/EUP; keep exp in f32 there.
    return not any(t in kind for t in ("v2", "v3", "v4", "v5"))


def scaled_dot_product_attention(queries, keys, values, params, head, *,
                                 attention_mask=None, b_tile=None,
                                 compute_dtype=jnp.bfloat16,
                                 out_dtype=jnp.float32):
    """Fused multi-head scaled-dot-product attention (QKV proj + softmax)."""
    b_s, nq, d_model = queries.shape
    nk = keys.shape[1]
    assert d_model % head == 0
    d_q = d_model // head
    sm_scale = float(1.0 / np.sqrt(d_q))

    vmem_cap = _vmem_capacity_bytes()

    # Rows-per-step target: feed the 256-wide MXU and amortize the ~0.35us
    # per-step overhead; smaller target on 64 MiB-VMEM chips (v7x).
    if b_tile is None:
        rows_target = 2048 if vmem_cap >= (96 << 20) else 1024
        b_tile = max(1, min(b_s, rows_target // max(nq, 1)))
    if b_s >= 2:
        # >= 2 grid steps so the 'parallel' batch axis can shard across both
        # v7x TensorCores (and the pipeline has something to overlap).
        b_tile = min(b_tile, b_s // 2)
    b_tile = max(1, min(b_tile, b_s))
    while b_s % b_tile:
        b_tile -= 1

    # nn.Linear: y = x @ W.T + b. Pre-transpose weights and fold 1/sqrt(d_q)
    # into the query projection (wrapper-side glue, not the hot path).
    wq_t = (params['wq'].T * sm_scale).astype(compute_dtype)
    wk_t = params['wk'].T.astype(compute_dtype)
    wv_t = params['wv'].T.astype(compute_dtype)
    bq = (params['bq'] * sm_scale).reshape(1, d_model).astype(jnp.float32)
    bk = params['bk'].reshape(1, d_model).astype(jnp.float32)
    bv = params['bv'].reshape(1, d_model).astype(jnp.float32)

    args = [queries.astype(compute_dtype), keys.astype(compute_dtype),
            values.astype(compute_dtype), wq_t, wk_t, wv_t, bq, bk, bv]
    use_mask = attention_mask is not None
    if use_mask:
        args.append(jnp.asarray(attention_mask).reshape(b_s, nk)
                    .astype(jnp.float32))

    exp_dtype = (jnp.bfloat16
                 if (_supports_bf16_eup()
                     and jnp.dtype(compute_dtype) == jnp.bfloat16)
                 else jnp.float32)
    # Flatten the output block only when d_model itself is not lane-dense.
    flat_ok = (d_model % 128) != 0

    common = dict(act_dtype=compute_dtype, w_dtype=compute_dtype,
                  out_dtype=out_dtype, vmem_cap=vmem_cap, use_mask=use_mask)
    # Config ladder: preferred layout first; later entries are compatibility
    # fallbacks for Mosaic builds that reject multi-batch-dim dot_general or
    # pl.Buffered(1) pipeline_mode (kernel math is identical in every config).
    attempts = (
        dict(batched_heads=True, flat_out=flat_ok,
             single_buffer_weights=True, exp_dtype=exp_dtype),
        dict(batched_heads=True, flat_out=flat_ok,
             single_buffer_weights=False, exp_dtype=exp_dtype),
        dict(batched_heads=False, flat_out=False,
             single_buffer_weights=True, exp_dtype=jnp.float32),
        dict(batched_heads=False, flat_out=False,
             single_buffer_weights=False, exp_dtype=jnp.float32),
    )
    last_err = None
    for cfg in attempts:
        try:
            call = _build_attention_call(b_s, nq, nk, d_model, head, b_tile,
                                         **common, **cfg)
            out = jax.block_until_ready(call(*args))
            return out.reshape(b_s, nq, d_model)
        except Exception as err:          # lowering / compile incompatibility
            last_err = err
    raise last_err


def _reference(queries, keys, values, params, head):
    """Pure-JAX (f32) reference mirroring the PyTorch forward."""
    b_s, nq, d_model = queries.shape
    nk = keys.shape[1]
    d_q = d_model // head
    q = queries @ params['wq'].T + params['bq']
    k = keys @ params['wk'].T + params['bk']
    v = values @ params['wv'].T + params['bv']
    q = q.reshape(b_s, nq, head, d_q).transpose(0, 2, 1, 3)
    k = k.reshape(b_s, nk, head, d_q).transpose(0, 2, 3, 1)
    v = v.reshape(b_s, nk, head, d_q).transpose(0, 2, 1, 3)
    att = jnp.matmul(q, k) / np.sqrt(d_q)
    att = jax.nn.softmax(att, axis=-1)
    return jnp.matmul(att, v).transpose(0, 2, 1, 3).reshape(b_s, nq, d_model)


if __name__ == "__main__":
    head = 4
    d_model = 32
    b_s, nq, nk = 4, 8, 8

    key = jax.random.PRNGKey(0)
    kq, kk, kv, k1, k2, k3, k4, k5, k6 = jax.random.split(key, 9)

    queries = jax.random.normal(kq, (b_s, nq, d_model), dtype=jnp.float32)
    keys_in = jax.random.normal(kk, (b_s, nk, d_model), dtype=jnp.float32)
    values = jax.random.normal(kv, (b_s, nk, d_model), dtype=jnp.float32)

    scale = 1.0 / np.sqrt(d_model)
    params = {
        'wq': jax.random.uniform(k1, (d_model, d_model), jnp.float32, -scale, scale),
        'bq': jax.random.uniform(k2, (d_model,), jnp.float32, -scale, scale),
        'wk': jax.random.uniform(k3, (d_model, d_model), jnp.float32, -scale, scale),
        'bk': jax.random.uniform(k4, (d_model,), jnp.float32, -scale, scale),
        'wv': jax.random.uniform(k5, (d_model, d_model), jnp.float32, -scale, scale),
        'bv': jax.random.uniform(k6, (d_model,), jnp.float32, -scale, scale),
    }

    # b_tile=2 -> grid of 2 steps, exercising the batch-tile index_map and the
    # 'parallel' megacore axis.
    out = scaled_dot_product_attention(queries, keys_in, values, params, head,
                                       b_tile=2)
    out = jax.block_until_ready(out)

    ref = _reference(queries, keys_in, values, params, head)
    # bf16 MXU operands, (possibly) bf16 exp + EUP approx reciprocal -> relaxed
    # tolerance vs the f32 reference.
    np.testing.assert_allclose(np.asarray(out), np.asarray(ref),
                               rtol=5e-2, atol=5e-2)
    print("KERNEL_OK")
</pallas_src>

<mosaic_0001>
module attributes {stable_mosaic.version = 11 : i64} {
  func.func @_attn_kernel(%arg0: i32, %arg1: memref<2x8x32xbf16, #tpu.memory_space<vmem>>, %arg2: memref<2x8x32xbf16, #tpu.memory_space<vmem>>, %arg3: memref<2x8x32xbf16, #tpu.memory_space<vmem>>, %arg4: memref<32x32xbf16, #tpu.memory_space<vmem>>, %arg5: memref<32x32xbf16, #tpu.memory_space<vmem>>, %arg6: memref<32x32xbf16, #tpu.memory_space<vmem>>, %arg7: memref<1x32xf32, #tpu.memory_space<vmem>>, %arg8: memref<1x32xf32, #tpu.memory_space<vmem>>, %arg9: memref<1x32xf32, #tpu.memory_space<vmem>>, %arg10: memref<2x8x32xf32, #tpu.memory_space<vmem>>) attributes {dimension_semantics = [#tpu.dimension_semantics<parallel>], iteration_bounds = array<i64: 2>, scalar_prefetch = 0 : i64, scratch_operands = 0 : i64, tpu.core_type = #tpu.core_type<tc>, window_params = [{transform_indices = @transform_0, window_bounds = array<i64: 2, 8, 32>}, {transform_indices = @transform_1, window_bounds = array<i64: 2, 8, 32>}, {transform_indices = @transform_2, window_bounds = array<i64: 2, 8, 32>}, {pipeline_mode = #tpu.pipeline_mode<synchronous>, transform_indices = @transform_3, window_bounds = array<i64: 32, 32>}, {pipeline_mode = #tpu.pipeline_mode<synchronous>, transform_indices = @transform_4, window_bounds = array<i64: 32, 32>}, {pipeline_mode = #tpu.pipeline_mode<synchronous>, transform_indices = @transform_5, window_bounds = array<i64: 32, 32>}, {pipeline_mode = #tpu.pipeline_mode<synchronous>, transform_indices = @transform_6, window_bounds = array<i64: 1, 32>}, {pipeline_mode = #tpu.pipeline_mode<synchronous>, transform_indices = @transform_7, window_bounds = array<i64: 1, 32>}, {pipeline_mode = #tpu.pipeline_mode<synchronous>, transform_indices = @transform_8, window_bounds = array<i64: 1, 32>}, {transform_indices = @transform_9, window_bounds = array<i64: 2, 8, 32>}]} {
    %c0 = arith.constant 0 : index
    %c0_0 = arith.constant 0 : index
    %c0_1 = arith.constant 0 : index
    %0 = vector.load %arg1[%c0, %c0_0, %c0_1] : memref<2x8x32xbf16, #tpu.memory_space<vmem>>, vector<2x8x32xbf16>
    %1 = vector.shape_cast %0 : vector<2x8x32xbf16> to vector<16x32xbf16>
    %c0_2 = arith.constant 0 : index
    %c0_3 = arith.constant 0 : index
    %c0_4 = arith.constant 0 : index
    %2 = vector.load %arg2[%c0_2, %c0_3, %c0_4] : memref<2x8x32xbf16, #tpu.memory_space<vmem>>, vector<2x8x32xbf16>
    %3 = vector.shape_cast %2 : vector<2x8x32xbf16> to vector<16x32xbf16>
    %c0_5 = arith.constant 0 : index
    %c0_6 = arith.constant 0 : index
    %c0_7 = arith.constant 0 : index
    %4 = vector.load %arg3[%c0_5, %c0_6, %c0_7] : memref<2x8x32xbf16, #tpu.memory_space<vmem>>, vector<2x8x32xbf16>
    %5 = vector.shape_cast %4 : vector<2x8x32xbf16> to vector<16x32xbf16>
    %c0_8 = arith.constant 0 : index
    %c0_9 = arith.constant 0 : index
    %6 = vector.load %arg4[%c0_8, %c0_9] : memref<32x32xbf16, #tpu.memory_space<vmem>>, vector<32x32xbf16>
    %cst = arith.constant dense<0.000000e+00> : vector<16x32xf32>
    %7 = tpu.matmul %1, %6, %cst {dimension_numbers = #tpu.dot_dimension_numbers<[1], [0], [0], [1], [0, 0, 1, 1], [], []>} : vector<16x32xbf16>, vector<32x32xbf16>, vector<16x32xf32> -> vector<16x32xf32>
    %c0_10 = arith.constant 0 : index
    %c0_11 = arith.constant 0 : index
    %8 = vector.load %arg7[%c0_10, %c0_11] : memref<1x32xf32, #tpu.memory_space<vmem>>, vector<1x32xf32>
    %9 = vector.broadcast %8 : vector<1x32xf32> to vector<16x32xf32>
    %10 = arith.addf %7, %9 : vector<16x32xf32>
    %11 = arith.truncf %10 : vector<16x32xf32> to vector<16x32xbf16>
    %c0_12 = arith.constant 0 : index
    %c0_13 = arith.constant 0 : index
    %12 = vector.load %arg5[%c0_12, %c0_13] : memref<32x32xbf16, #tpu.memory_space<vmem>>, vector<32x32xbf16>
    %cst_14 = arith.constant dense<0.000000e+00> : vector<16x32xf32>
    %13 = tpu.matmul %3, %12, %cst_14 {dimension_numbers = #tpu.dot_dimension_numbers<[1], [0], [0], [1], [0, 0, 1, 1], [], []>} : vector<16x32xbf16>, vector<32x32xbf16>, vector<16x32xf32> -> vector<16x32xf32>
    %c0_15 = arith.constant 0 : index
    %c0_16 = arith.constant 0 : index
    %14 = vector.load %arg8[%c0_15, %c0_16] : memref<1x32xf32, #tpu.memory_space<vmem>>, vector<1x32xf32>
    %15 = vector.broadcast %14 : vector<1x32xf32> to vector<16x32xf32>
    %16 = arith.addf %13, %15 : vector<16x32xf32>
    %17 = arith.truncf %16 : vector<16x32xf32> to vector<16x32xbf16>
    %c0_17 = arith.constant 0 : index
    %c0_18 = arith.constant 0 : index
    %18 = vector.load %arg6[%c0_17, %c0_18] : memref<32x32xbf16, #tpu.memory_space<vmem>>, vector<32x32xbf16>
    %cst_19 = arith.constant dense<0.000000e+00> : vector<16x32xf32>
    %19 = tpu.matmul %5, %18, %cst_19 {dimension_numbers = #tpu.dot_dimension_numbers<[1], [0], [0], [1], [0, 0, 1, 1], [], []>} : vector<16x32xbf16>, vector<32x32xbf16>, vector<16x32xf32> -> vector<16x32xf32>
    %c0_20 = arith.constant 0 : index
    %c0_21 = arith.constant 0 : index
    %20 = vector.load %arg9[%c0_20, %c0_21] : memref<1x32xf32, #tpu.memory_space<vmem>>, vector<1x32xf32>
    %21 = vector.broadcast %20 : vector<1x32xf32> to vector<16x32xf32>
    %22 = arith.addf %19, %21 : vector<16x32xf32>
    %23 = arith.truncf %22 : vector<16x32xf32> to vector<16x32xbf16>
    %24 = vector.shape_cast %11 : vector<16x32xbf16> to vector<2x8x32xbf16>
    %25 = vector.shape_cast %17 : vector<16x32xbf16> to vector<2x8x32xbf16>
    %26 = vector.shape_cast %23 : vector<16x32xbf16> to vector<2x8x32xbf16>
    %27 = vector.extract_strided_slice %24 {offsets = [0, 0, 0], sizes = [2, 8, 8], strides = [1, 1, 1]} : vector<2x8x32xbf16> to vector<2x8x8xbf16>
    %28 = vector.extract_strided_slice %25 {offsets = [0, 0, 0], sizes = [2, 8, 8], strides = [1, 1, 1]} : vector<2x8x32xbf16> to vector<2x8x8xbf16>
    "tpu.trace_start"() <{level = 10 : i32, message = "bqd,bkd->bqk"}> : () -> ()
    %cst_22 = arith.constant dense<0.000000e+00> : vector<2x8x8xf32>
    %29 = tpu.matmul %27, %28, %cst_22 {dimension_numbers = #tpu.dot_dimension_numbers<[2], [2], [1], [1], [0, 0, 0, 1, 1, 1], [0], [0]>} : vector<2x8x8xbf16>, vector<2x8x8xbf16>, vector<2x8x8xf32> -> vector<2x8x8xf32>
    "tpu.trace_stop"() : () -> ()
    %cst_23 = arith.constant dense<0xFF800000> : vector<2x8xf32>
    %30 = vector.multi_reduction <maximumf>, %29, %cst_23 [2] : vector<2x8x8xf32> to vector<2x8xf32>
    %31 = vector.shape_cast %30 : vector<2x8xf32> to vector<2x8x1xf32>
    %32 = vector.broadcast %31 : vector<2x8x1xf32> to vector<2x8x8xf32>
    %33 = arith.subf %29, %32 : vector<2x8x8xf32>
    %34 = math.exp %33 : vector<2x8x8xf32>
    %cst_24 = arith.constant dense<0.000000e+00> : vector<2x8xf32>
    %35 = vector.multi_reduction <add>, %34, %cst_24 [2] : vector<2x8x8xf32> to vector<2x8xf32>
    %36 = vector.shape_cast %35 : vector<2x8xf32> to vector<2x8x1xf32>
    %37 = tpu.reciprocal %36 {approx = true} : vector<2x8x1xf32> -> vector<2x8x1xf32>
    %38 = vector.broadcast %37 : vector<2x8x1xf32> to vector<2x8x8xf32>
    %39 = arith.mulf %34, %38 : vector<2x8x8xf32>
    %40 = arith.truncf %39 : vector<2x8x8xf32> to vector<2x8x8xbf16>
    %41 = vector.extract_strided_slice %26 {offsets = [0, 0, 0], sizes = [2, 8, 8], strides = [1, 1, 1]} : vector<2x8x32xbf16> to vector<2x8x8xbf16>
    "tpu.trace_start"() <{level = 10 : i32, message = "bqk,bkd->bqd"}> : () -> ()
    %cst_25 = arith.constant dense<0.000000e+00> : vector<2x8x8xf32>
    %42 = tpu.matmul %40, %41, %cst_25 {dimension_numbers = #tpu.dot_dimension_numbers<[2], [1], [1], [2], [0, 0, 0, 1, 1, 2], [0], [0]>} : vector<2x8x8xbf16>, vector<2x8x8xbf16>, vector<2x8x8xf32> -> vector<2x8x8xf32>
    "tpu.trace_stop"() : () -> ()
    %43 = vector.extract_strided_slice %24 {offsets = [0, 0, 8], sizes = [2, 8, 8], strides = [1, 1, 1]} : vector<2x8x32xbf16> to vector<2x8x8xbf16>
    %44 = vector.extract_strided_slice %25 {offsets = [0, 0, 8], sizes = [2, 8, 8], strides = [1, 1, 1]} : vector<2x8x32xbf16> to vector<2x8x8xbf16>
    "tpu.trace_start"() <{level = 10 : i32, message = "bqd,bkd->bqk"}> : () -> ()
    %cst_26 = arith.constant dense<0.000000e+00> : vector<2x8x8xf32>
    %45 = tpu.matmul %43, %44, %cst_26 {dimension_numbers = #tpu.dot_dimension_numbers<[2], [2], [1], [1], [0, 0, 0, 1, 1, 1], [0], [0]>} : vector<2x8x8xbf16>, vector<2x8x8xbf16>, vector<2x8x8xf32> -> vector<2x8x8xf32>
    "tpu.trace_stop"() : () -> ()
    %cst_27 = arith.constant dense<0xFF800000> : vector<2x8xf32>
    %46 = vector.multi_reduction <maximumf>, %45, %cst_27 [2] : vector<2x8x8xf32> to vector<2x8xf32>
    %47 = vector.shape_cast %46 : vector<2x8xf32> to vector<2x8x1xf32>
    %48 = vector.broadcast %47 : vector<2x8x1xf32> to vector<2x8x8xf32>
    %49 = arith.subf %45, %48 : vector<2x8x8xf32>
    %50 = math.exp %49 : vector<2x8x8xf32>
    %cst_28 = arith.constant dense<0.000000e+00> : vector<2x8xf32>
    %51 = vector.multi_reduction <add>, %50, %cst_28 [2] : vector<2x8x8xf32> to vector<2x8xf32>
    %52 = vector.shape_cast %51 : vector<2x8xf32> to vector<2x8x1xf32>
    %53 = tpu.reciprocal %52 {approx = true} : vector<2x8x1xf32> -> vector<2x8x1xf32>
    %54 = vector.broadcast %53 : vector<2x8x1xf32> to vector<2x8x8xf32>
    %55 = arith.mulf %50, %54 : vector<2x8x8xf32>
    %56 = arith.truncf %55 : vector<2x8x8xf32> to vector<2x8x8xbf16>
    %57 = vector.extract_strided_slice %26 {offsets = [0, 0, 8], sizes = [2, 8, 8], strides = [1, 1, 1]} : vector<2x8x32xbf16> to vector<2x8x8xbf16>
    "tpu.trace_start"() <{level = 10 : i32, message = "bqk,bkd->bqd"}> : () -> ()
    %cst_29 = arith.constant dense<0.000000e+00> : vector<2x8x8xf32>
    %58 = tpu.matmul %56, %57, %cst_29 {dimension_numbers = #tpu.dot_dimension_numbers<[2], [1], [1], [2], [0, 0, 0, 1, 1, 2], [0], [0]>} : vector<2x8x8xbf16>, vector<2x8x8xbf16>, vector<2x8x8xf32> -> vector<2x8x8xf32>
    "tpu.trace_stop"() : () -> ()
    %59 = vector.extract_strided_slice %24 {offsets = [0, 0, 16], sizes = [2, 8, 8], strides = [1, 1, 1]} : vector<2x8x32xbf16> to vector<2x8x8xbf16>
    %60 = vector.extract_strided_slice %25 {offsets = [0, 0, 16], sizes = [2, 8, 8], strides = [1, 1, 1]} : vector<2x8x32xbf16> to vector<2x8x8xbf16>
    "tpu.trace_start"() <{level = 10 : i32, message = "bqd,bkd->bqk"}> : () -> ()
    %cst_30 = arith.constant dense<0.000000e+00> : vector<2x8x8xf32>
    %61 = tpu.matmul %59, %60, %cst_30 {dimension_numbers = #tpu.dot_dimension_numbers<[2], [2], [1], [1], [0, 0, 0, 1, 1, 1], [0], [0]>} : vector<2x8x8xbf16>, vector<2x8x8xbf16>, vector<2x8x8xf32> -> vector<2x8x8xf32>
    "tpu.trace_stop"() : () -> ()
    %cst_31 = arith.constant dense<0xFF800000> : vector<2x8xf32>
    %62 = vector.multi_reduction <maximumf>, %61, %cst_31 [2] : vector<2x8x8xf32> to vector<2x8xf32>
    %63 = vector.shape_cast %62 : vector<2x8xf32> to vector<2x8x1xf32>
    %64 = vector.broadcast %63 : vector<2x8x1xf32> to vector<2x8x8xf32>
    %65 = arith.subf %61, %64 : vector<2x8x8xf32>
    %66 = math.exp %65 : vector<2x8x8xf32>
    %cst_32 = arith.constant dense<0.000000e+00> : vector<2x8xf32>
    %67 = vector.multi_reduction <add>, %66, %cst_32 [2] : vector<2x8x8xf32> to vector<2x8xf32>
    %68 = vector.shape_cast %67 : vector<2x8xf32> to vector<2x8x1xf32>
    %69 = tpu.reciprocal %68 {approx = true} : vector<2x8x1xf32> -> vector<2x8x1xf32>
    %70 = vector.broadcast %69 : vector<2x8x1xf32> to vector<2x8x8xf32>
    %71 = arith.mulf %66, %70 : vector<2x8x8xf32>
    %72 = arith.truncf %71 : vector<2x8x8xf32> to vector<2x8x8xbf16>
    %73 = vector.extract_strided_slice %26 {offsets = [0, 0, 16], sizes = [2, 8, 8], strides = [1, 1, 1]} : vector<2x8x32xbf16> to vector<2x8x8xbf16>
    "tpu.trace_start"() <{level = 10 : i32, message = "bqk,bkd->bqd"}> : () -> ()
    %cst_33 = arith.constant dense<0.000000e+00> : vector<2x8x8xf32>
    %74 = tpu.matmul %72, %73, %cst_33 {dimension_numbers = #tpu.dot_dimension_numbers<[2], [1], [1], [2], [0, 0, 0, 1, 1, 2], [0], [0]>} : vector<2x8x8xbf16>, vector<2x8x8xbf16>, vector<2x8x8xf32> -> vector<2x8x8xf32>
    "tpu.trace_stop"() : () -> ()
    %75 = vector.extract_strided_slice %24 {offsets = [0, 0, 24], sizes = [2, 8, 8], strides = [1, 1, 1]} : vector<2x8x32xbf16> to vector<2x8x8xbf16>
    %76 = vector.extract_strided_slice %25 {offsets = [0, 0, 24], sizes = [2, 8, 8], strides = [1, 1, 1]} : vector<2x8x32xbf16> to vector<2x8x8xbf16>
    "tpu.trace_start"() <{level = 10 : i32, message = "bqd,bkd->bqk"}> : () -> ()
    %cst_34 = arith.constant dense<0.000000e+00> : vector<2x8x8xf32>
    %77 = tpu.matmul %75, %76, %cst_34 {dimension_numbers = #tpu.dot_dimension_numbers<[2], [2], [1], [1], [0, 0, 0, 1, 1, 1], [0], [0]>} : vector<2x8x8xbf16>, vector<2x8x8xbf16>, vector<2x8x8xf32> -> vector<2x8x8xf32>
    "tpu.trace_stop"() : () -> ()
    %cst_35 = arith.constant dense<0xFF800000> : vector<2x8xf32>
    %78 = vector.multi_reduction <maximumf>, %77, %cst_35 [2] : vector<2x8x8xf32> to vector<2x8xf32>
    %79 = vector.shape_cast %78 : vector<2x8xf32> to vector<2x8x1xf32>
    %80 = vector.broadcast %79 : vector<2x8x1xf32> to vector<2x8x8xf32>
    %81 = arith.subf %77, %80 : vector<2x8x8xf32>
    %82 = math.exp %81 : vector<2x8x8xf32>
    %cst_36 = arith.constant dense<0.000000e+00> : vector<2x8xf32>
    %83 = vector.multi_reduction <add>, %82, %cst_36 [2] : vector<2x8x8xf32> to vector<2x8xf32>
    %84 = vector.shape_cast %83 : vector<2x8xf32> to vector<2x8x1xf32>
    %85 = tpu.reciprocal %84 {approx = true} : vector<2x8x1xf32> -> vector<2x8x1xf32>
    %86 = vector.broadcast %85 : vector<2x8x1xf32> to vector<2x8x8xf32>
    %87 = arith.mulf %82, %86 : vector<2x8x8xf32>
    %88 = arith.truncf %87 : vector<2x8x8xf32> to vector<2x8x8xbf16>
    %89 = vector.extract_strided_slice %26 {offsets = [0, 0, 24], sizes = [2, 8, 8], strides = [1, 1, 1]} : vector<2x8x32xbf16> to vector<2x8x8xbf16>
    "tpu.trace_start"() <{level = 10 : i32, message = "bqk,bkd->bqd"}> : () -> ()
    %cst_37 = arith.constant dense<0.000000e+00> : vector<2x8x8xf32>
    %90 = tpu.matmul %88, %89, %cst_37 {dimension_numbers = #tpu.dot_dimension_numbers<[2], [1], [1], [2], [0, 0, 0, 1, 1, 2], [0], [0]>} : vector<2x8x8xbf16>, vector<2x8x8xbf16>, vector<2x8x8xf32> -> vector<2x8x8xf32>
    "tpu.trace_stop"() : () -> ()
    %91 = tpu.concatenate %42, %58, %74, %90 in 2 : vector<2x8x8xf32>, vector<2x8x8xf32>, vector<2x8x8xf32>, vector<2x8x8xf32> -> vector<2x8x32xf32>
    %c0_38 = arith.constant 0 : index
    %c0_39 = arith.constant 0 : index
    %c0_40 = arith.constant 0 : index
    %92 = vector.load %arg10[%c0_38, %c0_39, %c0_40] : memref<2x8x32xf32, #tpu.memory_space<vmem>>, vector<2x8x32xf32>
    tpu.vector_store %arg10[%c0_38, %c0_39, %c0_40], %91 {strides = array<i32>} : memref<2x8x32xf32, #tpu.memory_space<vmem>>, vector<2x8x32xf32>,
    return
  }
  func.func @transform_0(%arg0: i32) -> (i32, i32, i32) {
    %c0_i32 = arith.constant 0 : i32
    %c0_i32_0 = arith.constant 0 : i32
    %c0_i32_1 = arith.constant 0 : i32
    return %arg0, %c0_i32, %c0_i32_0 : i32, i32, i32
  }
  func.func @transform_1(%arg0: i32) -> (i32, i32, i32) {
    %c0_i32 = arith.constant 0 : i32
    %c0_i32_0 = arith.constant 0 : i32
    %c0_i32_1 = arith.constant 0 : i32
    return %arg0, %c0_i32, %c0_i32_0 : i32, i32, i32
  }
  func.func @transform_2(%arg0: i32) -> (i32, i32, i32) {
    %c0_i32 = arith.constant 0 : i32
    %c0_i32_0 = arith.constant 0 : i32
    %c0_i32_1 = arith.constant 0 : i32
    return %arg0, %c0_i32, %c0_i32_0 : i32, i32, i32
  }
  func.func @transform_3(%arg0: i32) -> (i32, i32) {
    %c0_i32 = arith.constant 0 : i32
    %c0_i32_0 = arith.constant 0 : i32
    %c0_i32_1 = arith.constant 0 : i32
    return %c0_i32, %c0_i32_0 : i32, i32
  }
  func.func @transform_4(%arg0: i32) -> (i32, i32) {
    %c0_i32 = arith.constant 0 : i32
    %c0_i32_0 = arith.constant 0 : i32
    %c0_i32_1 = arith.constant 0 : i32
    return %c0_i32, %c0_i32_0 : i32, i32
  }
  func.func @transform_5(%arg0: i32) -> (i32, i32) {
    %c0_i32 = arith.constant 0 : i32
    %c0_i32_0 = arith.constant 0 : i32
    %c0_i32_1 = arith.constant 0 : i32
    return %c0_i32, %c0_i32_0 : i32, i32
  }
  func.func @transform_6(%arg0: i32) -> (i32, i32) {
    %c0_i32 = arith.constant 0 : i32
    %c0_i32_0 = arith.constant 0 : i32
    %c0_i32_1 = arith.constant 0 : i32
    return %c0_i32, %c0_i32_0 : i32, i32
  }
  func.func @transform_7(%arg0: i32) -> (i32, i32) {
    %c0_i32 = arith.constant 0 : i32
    %c0_i32_0 = arith.constant 0 : i32
    %c0_i32_1 = arith.constant 0 : i32
    return %c0_i32, %c0_i32_0 : i32, i32
  }
  func.func @transform_8(%arg0: i32) -> (i32, i32) {
    %c0_i32 = arith.constant 0 : i32
    %c0_i32_0 = arith.constant 0 : i32
    %c0_i32_1 = arith.constant 0 : i32
    return %c0_i32, %c0_i32_0 : i32, i32
  }
  func.func @transform_9(%arg0: i32) -> (i32, i32, i32) {
    %c0_i32 = arith.constant 0 : i32
    %c0_i32_0 = arith.constant 0 : i32
    %c0_i32_1 = arith.constant 0 : i32
    return %arg0, %c0_i32, %c0_i32_0 : i32, i32, i32
  }
}

module attributes {stable_mosaic.version = 11 : i64} {
  func.func @_attn_kernel(%arg0: i32, %arg1: memref<2x8x32xbf16, #tpu.memory_space<vmem>>, %arg2: memref<2x8x32xbf16, #tpu.memory_space<vmem>>, %arg3: memref<2x8x32xbf16, #tpu.memory_space<vmem>>, %arg4: memref<32x32xbf16, #tpu.memory_space<vmem>>, %arg5: memref<32x32xbf16, #tpu.memory_space<vmem>>, %arg6: memref<32x32xbf16, #tpu.memory_space<vmem>>, %arg7: memref<1x32xf32, #tpu.memory_space<vmem>>, %arg8: memref<1x32xf32, #tpu.memory_space<vmem>>, %arg9: memref<1x32xf32, #tpu.memory_space<vmem>>, %arg10: memref<2x8x32xf32, #tpu.memory_space<vmem>>) attributes {dimension_semantics = [#tpu.dimension_semantics<parallel>], iteration_bounds = array<i64: 2>, scalar_prefetch = 0 : i64, scratch_operands = 0 : i64, tpu.core_type = #tpu.core_type<tc>, window_params = [{transform_indices = @transform_0, window_bounds = array<i64: 2, 8, 32>}, {transform_indices = @transform_1, window_bounds = array<i64: 2, 8, 32>}, {transform_indices = @transform_2, window_bounds = array<i64: 2, 8, 32>}, {pipeline_mode = #tpu.pipeline_mode<synchronous>, transform_indices = @transform_3, window_bounds = array<i64: 32, 32>}, {pipeline_mode = #tpu.pipeline_mode<synchronous>, transform_indices = @transform_4, window_bounds = array<i64: 32, 32>}, {pipeline_mode = #tpu.pipeline_mode<synchronous>, transform_indices = @transform_5, window_bounds = array<i64: 32, 32>}, {pipeline_mode = #tpu.pipeline_mode<synchronous>, transform_indices = @transform_6, window_bounds = array<i64: 1, 32>}, {pipeline_mode = #tpu.pipeline_mode<synchronous>, transform_indices = @transform_7, window_bounds = array<i64: 1, 32>}, {pipeline_mode = #tpu.pipeline_mode<synchronous>, transform_indices = @transform_8, window_bounds = array<i64: 1, 32>}, {transform_indices = @transform_9, window_bounds = array<i64: 2, 8, 32>}]} {
    %c0 = arith.constant 0 : index
    %c0_0 = arith.constant 0 : index
    %c0_1 = arith.constant 0 : index
    %0 = vector.load %arg1[%c0, %c0_0, %c0_1] : memref<2x8x32xbf16, #tpu.memory_space<vmem>>, vector<2x8x32xbf16>
    %1 = vector.shape_cast %0 : vector<2x8x32xbf16> to vector<16x32xbf16>
    %c0_2 = arith.constant 0 : index
    %c0_3 = arith.constant 0 : index
    %c0_4 = arith.constant 0 : index
    %2 = vector.load %arg2[%c0_2, %c0_3, %c0_4] : memref<2x8x32xbf16, #tpu.memory_space<vmem>>, vector<2x8x32xbf16>
    %3 = vector.shape_cast %2 : vector<2x8x32xbf16> to vector<16x32xbf16>
    %c0_5 = arith.constant 0 : index
    %c0_6 = arith.constant 0 : index
    %c0_7 = arith.constant 0 : index
    %4 = vector.load %arg3[%c0_5, %c0_6, %c0_7] : memref<2x8x32xbf16, #tpu.memory_space<vmem>>, vector<2x8x32xbf16>
    %5 = vector.shape_cast %4 : vector<2x8x32xbf16> to vector<16x32xbf16>
    %c0_8 = arith.constant 0 : index
    %c0_9 = arith.constant 0 : index
    %6 = vector.load %arg4[%c0_8, %c0_9] : memref<32x32xbf16, #tpu.memory_space<vmem>>, vector<32x32xbf16>
    %cst = arith.constant dense<0.000000e+00> : vector<16x32xf32>
    %7 = tpu.matmul %1, %6, %cst {dimension_numbers = #tpu.dot_dimension_numbers<[1], [0], [0], [1], [0, 0, 1, 1], [], []>} : vector<16x32xbf16>, vector<32x32xbf16>, vector<16x32xf32> -> vector<16x32xf32>
    %c0_10 = arith.constant 0 : index
    %c0_11 = arith.constant 0 : index
    %8 = vector.load %arg7[%c0_10, %c0_11] : memref<1x32xf32, #tpu.memory_space<vmem>>, vector<1x32xf32>
    %9 = vector.broadcast %8 : vector<1x32xf32> to vector<16x32xf32>
    %10 = arith.addf %7, %9 : vector<16x32xf32>
    %11 = arith.truncf %10 : vector<16x32xf32> to vector<16x32xbf16>
    %c0_12 = arith.constant 0 : index
    %c0_13 = arith.constant 0 : index
    %12 = vector.load %arg5[%c0_12, %c0_13] : memref<32x32xbf16, #tpu.memory_space<vmem>>, vector<32x32xbf16>
    %cst_14 = arith.constant dense<0.000000e+00> : vector<16x32xf32>
    %13 = tpu.matmul %3, %12, %cst_14 {dimension_numbers = #tpu.dot_dimension_numbers<[1], [0], [0], [1], [0, 0, 1, 1], [], []>} : vector<16x32xbf16>, vector<32x32xbf16>, vector<16x32xf32> -> vector<16x32xf32>
    %c0_15 = arith.constant 0 : index
    %c0_16 = arith.constant 0 : index
    %14 = vector.load %arg8[%c0_15, %c0_16] : memref<1x32xf32, #tpu.memory_space<vmem>>, vector<1x32xf32>
    %15 = vector.broadcast %14 : vector<1x32xf32> to vector<16x32xf32>
    %16 = arith.addf %13, %15 : vector<16x32xf32>
    %17 = arith.truncf %16 : vector<16x32xf32> to vector<16x32xbf16>
    %c0_17 = arith.constant 0 : index
    %c0_18 = arith.constant 0 : index
    %18 = vector.load %arg6[%c0_17, %c0_18] : memref<32x32xbf16, #tpu.memory_space<vmem>>, vector<32x32xbf16>
    %cst_19 = arith.constant dense<0.000000e+00> : vector<16x32xf32>
    %19 = tpu.matmul %5, %18, %cst_19 {dimension_numbers = #tpu.dot_dimension_numbers<[1], [0], [0], [1], [0, 0, 1, 1], [], []>} : vector<16x32xbf16>, vector<32x32xbf16>, vector<16x32xf32> -> vector<16x32xf32>
    %c0_20 = arith.constant 0 : index
    %c0_21 = arith.constant 0 : index
    %20 = vector.load %arg9[%c0_20, %c0_21] : memref<1x32xf32, #tpu.memory_space<vmem>>, vector<1x32xf32>
    %21 = vector.broadcast %20 : vector<1x32xf32> to vector<16x32xf32>
    %22 = arith.addf %19, %21 : vector<16x32xf32>
    %23 = arith.truncf %22 : vector<16x32xf32> to vector<16x32xbf16>
    %24 = vector.shape_cast %11 : vector<16x32xbf16> to vector<2x8x32xbf16>
    %25 = vector.shape_cast %17 : vector<16x32xbf16> to vector<2x8x32xbf16>
    %26 = vector.shape_cast %23 : vector<16x32xbf16> to vector<2x8x32xbf16>
    %27 = vector.extract_strided_slice %24 {offsets = [0, 0, 0], sizes = [2, 8, 8], strides = [1, 1, 1]} : vector<2x8x32xbf16> to vector<2x8x8xbf16>
    %28 = vector.extract_strided_slice %25 {offsets = [0, 0, 0], sizes = [2, 8, 8], strides = [1, 1, 1]} : vector<2x8x32xbf16> to vector<2x8x8xbf16>
    "tpu.trace_start"() <{level = 10 : i32, message = "bqd,bkd->bqk"}> : () -> ()
    %cst_22 = arith.constant dense<0.000000e+00> : vector<2x8x8xf32>
    %29 = tpu.matmul %27, %28, %cst_22 {dimension_numbers = #tpu.dot_dimension_numbers<[2], [2], [1], [1], [0, 0, 0, 1, 1, 1], [0], [0]>} : vector<2x8x8xbf16>, vector<2x8x8xbf16>, vector<2x8x8xf32> -> vector<2x8x8xf32>
    "tpu.trace_stop"() : () -> ()
    %cst_23 = arith.constant dense<0xFF800000> : vector<2x8xf32>
    %30 = vector.multi_reduction <maximumf>, %29, %cst_23 [2] : vector<2x8x8xf32> to vector<2x8xf32>
    %31 = vector.shape_cast %30 : vector<2x8xf32> to vector<2x8x1xf32>
    %32 = vector.broadcast %31 : vector<2x8x1xf32> to vector<2x8x8xf32>
    %33 = arith.subf %29, %32 : vector<2x8x8xf32>
    %34 = math.exp %33 : vector<2x8x8xf32>
    %cst_24 = arith.constant dense<0.000000e+00> : vector<2x8xf32>
    %35 = vector.multi_reduction <add>, %34, %cst_24 [2] : vector<2x8x8xf32> to vector<2x8xf32>
    %36 = vector.shape_cast %35 : vector<2x8xf32> to vector<2x8x1xf32>
    %37 = tpu.reciprocal %36 {approx = true} : vector<2x8x1xf32> -> vector<2x8x1xf32>
    %38 = vector.broadcast %37 : vector<2x8x1xf32> to vector<2x8x8xf32>
    %39 = arith.mulf %34, %38 : vector<2x8x8xf32>
    %40 = arith.truncf %39 : vector<2x8x8xf32> to vector<2x8x8xbf16>
    %41 = vector.extract_strided_slice %26 {offsets = [0, 0, 0], sizes = [2, 8, 8], strides = [1, 1, 1]} : vector<2x8x32xbf16> to vector<2x8x8xbf16>
    "tpu.trace_start"() <{level = 10 : i32, message = "bqk,bkd->bqd"}> : () -> ()
    %cst_25 = arith.constant dense<0.000000e+00> : vector<2x8x8xf32>
    %42 = tpu.matmul %40, %41, %cst_25 {dimension_numbers = #tpu.dot_dimension_numbers<[2], [1], [1], [2], [0, 0, 0, 1, 1, 2], [0], [0]>} : vector<2x8x8xbf16>, vector<2x8x8xbf16>, vector<2x8x8xf32> -> vector<2x8x8xf32>
    "tpu.trace_stop"() : () -> ()
    %43 = vector.extract_strided_slice %24 {offsets = [0, 0, 8], sizes = [2, 8, 8], strides = [1, 1, 1]} : vector<2x8x32xbf16> to vector<2x8x8xbf16>
    %44 = vector.extract_strided_slice %25 {offsets = [0, 0, 8], sizes = [2, 8, 8], strides = [1, 1, 1]} : vector<2x8x32xbf16> to vector<2x8x8xbf16>
    "tpu.trace_start"() <{level = 10 : i32, message = "bqd,bkd->bqk"}> : () -> ()
    %cst_26 = arith.constant dense<0.000000e+00> : vector<2x8x8xf32>
    %45 = tpu.matmul %43, %44, %cst_26 {dimension_numbers = #tpu.dot_dimension_numbers<[2], [2], [1], [1], [0, 0, 0, 1, 1, 1], [0], [0]>} : vector<2x8x8xbf16>, vector<2x8x8xbf16>, vector<2x8x8xf32> -> vector<2x8x8xf32>
    "tpu.trace_stop"() : () -> ()
    %cst_27 = arith.constant dense<0xFF800000> : vector<2x8xf32>
    %46 = vector.multi_reduction <maximumf>, %45, %cst_27 [2] : vector<2x8x8xf32> to vector<2x8xf32>
    %47 = vector.shape_cast %46 : vector<2x8xf32> to vector<2x8x1xf32>
    %48 = vector.broadcast %47 : vector<2x8x1xf32> to vector<2x8x8xf32>
    %49 = arith.subf %45, %48 : vector<2x8x8xf32>
    %50 = math.exp %49 : vector<2x8x8xf32>
    %cst_28 = arith.constant dense<0.000000e+00> : vector<2x8xf32>
    %51 = vector.multi_reduction <add>, %50, %cst_28 [2] : vector<2x8x8xf32> to vector<2x8xf32>
    %52 = vector.shape_cast %51 : vector<2x8xf32> to vector<2x8x1xf32>
    %53 = tpu.reciprocal %52 {approx = true} : vector<2x8x1xf32> -> vector<2x8x1xf32>
    %54 = vector.broadcast %53 : vector<2x8x1xf32> to vector<2x8x8xf32>
    %55 = arith.mulf %50, %54 : vector<2x8x8xf32>
    %56 = arith.truncf %55 : vector<2x8x8xf32> to vector<2x8x8xbf16>
    %57 = vector.extract_strided_slice %26 {offsets = [0, 0, 8], sizes = [2, 8, 8], strides = [1, 1, 1]} : vector<2x8x32xbf16> to vector<2x8x8xbf16>
    "tpu.trace_start"() <{level = 10 : i32, message = "bqk,bkd->bqd"}> : () -> ()
    %cst_29 = arith.constant dense<0.000000e+00> : vector<2x8x8xf32>
    %58 = tpu.matmul %56, %57, %cst_29 {dimension_numbers = #tpu.dot_dimension_numbers<[2], [1], [1], [2], [0, 0, 0, 1, 1, 2], [0], [0]>} : vector<2x8x8xbf16>, vector<2x8x8xbf16>, vector<2x8x8xf32> -> vector<2x8x8xf32>
    "tpu.trace_stop"() : () -> ()
    %59 = vector.extract_strided_slice %24 {offsets = [0, 0, 16], sizes = [2, 8, 8], strides = [1, 1, 1]} : vector<2x8x32xbf16> to vector<2x8x8xbf16>
    %60 = vector.extract_strided_slice %25 {offsets = [0, 0, 16], sizes = [2, 8, 8], strides = [1, 1, 1]} : vector<2x8x32xbf16> to vector<2x8x8xbf16>
    "tpu.trace_start"() <{level = 10 : i32, message = "bqd,bkd->bqk"}> : () -> ()
    %cst_30 = arith.constant dense<0.000000e+00> : vector<2x8x8xf32>
    %61 = tpu.matmul %59, %60, %cst_30 {dimension_numbers = #tpu.dot_dimension_numbers<[2], [2], [1], [1], [0, 0, 0, 1, 1, 1], [0], [0]>} : vector<2x8x8xbf16>, vector<2x8x8xbf16>, vector<2x8x8xf32> -> vector<2x8x8xf32>
    "tpu.trace_stop"() : () -> ()
    %cst_31 = arith.constant dense<0xFF800000> : vector<2x8xf32>
    %62 = vector.multi_reduction <maximumf>, %61, %cst_31 [2] : vector<2x8x8xf32> to vector<2x8xf32>
    %63 = vector.shape_cast %62 : vector<2x8xf32> to vector<2x8x1xf32>
    %64 = vector.broadcast %63 : vector<2x8x1xf32> to vector<2x8x8xf32>
    %65 = arith.subf %61, %64 : vector<2x8x8xf32>
    %66 = math.exp %65 : vector<2x8x8xf32>
    %cst_32 = arith.constant dense<0.000000e+00> : vector<2x8xf32>
    %67 = vector.multi_reduction <add>, %66, %cst_32 [2] : vector<2x8x8xf32> to vector<2x8xf32>
    %68 = vector.shape_cast %67 : vector<2x8xf32> to vector<2x8x1xf32>
    %69 = tpu.reciprocal %68 {approx = true} : vector<2x8x1xf32> -> vector<2x8x1xf32>
    %70 = vector.broadcast %69 : vector<2x8x1xf32> to vector<2x8x8xf32>
    %71 = arith.mulf %66, %70 : vector<2x8x8xf32>
    %72 = arith.truncf %71 : vector<2x8x8xf32> to vector<2x8x8xbf16>
    %73 = vector.extract_strided_slice %26 {offsets = [0, 0, 16], sizes = [2, 8, 8], strides = [1, 1, 1]} : vector<2x8x32xbf16> to vector<2x8x8xbf16>
    "tpu.trace_start"() <{level = 10 : i32, message = "bqk,bkd->bqd"}> : () -> ()
    %cst_33 = arith.constant dense<0.000000e+00> : vector<2x8x8xf32>
    %74 = tpu.matmul %72, %73, %cst_33 {dimension_numbers = #tpu.dot_dimension_numbers<[2], [1], [1], [2], [0, 0, 0, 1, 1, 2], [0], [0]>} : vector<2x8x8xbf16>, vector<2x8x8xbf16>, vector<2x8x8xf32> -> vector<2x8x8xf32>
    "tpu.trace_stop"() : () -> ()
    %75 = vector.extract_strided_slice %24 {offsets = [0, 0, 24], sizes = [2, 8, 8], strides = [1, 1, 1]} : vector<2x8x32xbf16> to vector<2x8x8xbf16>
    %76 = vector.extract_strided_slice %25 {offsets = [0, 0, 24], sizes = [2, 8, 8], strides = [1, 1, 1]} : vector<2x8x32xbf16> to vector<2x8x8xbf16>
    "tpu.trace_start"() <{level = 10 : i32, message = "bqd,bkd->bqk"}> : () -> ()
    %cst_34 = arith.constant dense<0.000000e+00> : vector<2x8x8xf32>
    %77 = tpu.matmul %75, %76, %cst_34 {dimension_numbers = #tpu.dot_dimension_numbers<[2], [2], [1], [1], [0, 0, 0, 1, 1, 1], [0], [0]>} : vector<2x8x8xbf16>, vector<2x8x8xbf16>, vector<2x8x8xf32> -> vector<2x8x8xf32>
    "tpu.trace_stop"() : () -> ()
    %cst_35 = arith.constant dense<0xFF800000> : vector<2x8xf32>
    %78 = vector.multi_reduction <maximumf>, %77, %cst_35 [2] : vector<2x8x8xf32> to vector<2x8xf32>
    %79 = vector.shape_cast %78 : vector<2x8xf32> to vector<2x8x1xf32>
    %80 = vector.broadcast %79 : vector<2x8x1xf32> to vector<2x8x8xf32>
    %81 = arith.subf %77, %80 : vector<2x8x8xf32>
    %82 = math.exp %81 : vector<2x8x8xf32>
    %cst_36 = arith.constant dense<0.000000e+00> : vector<2x8xf32>
    %83 = vector.multi_reduction <add>, %82, %cst_36 [2] : vector<2x8x8xf32> to vector<2x8xf32>
    %84 = vector.shape_cast %83 : vector<2x8xf32> to vector<2x8x1xf32>
    %85 = tpu.reciprocal %84 {approx = true} : vector<2x8x1xf32> -> vector<2x8x1xf32>
    %86 = vector.broadcast %85 : vector<2x8x1xf32> to vector<2x8x8xf32>
    %87 = arith.mulf %82, %86 : vector<2x8x8xf32>
    %88 = arith.truncf %87 : vector<2x8x8xf32> to vector<2x8x8xbf16>
    %89 = vector.extract_strided_slice %26 {offsets = [0, 0, 24], sizes = [2, 8, 8], strides = [1, 1, 1]} : vector<2x8x32xbf16> to vector<2x8x8xbf16>
    "tpu.trace_start"() <{level = 10 : i32, message = "bqk,bkd->bqd"}> : () -> ()
    %cst_37 = arith.constant dense<0.000000e+00> : vector<2x8x8xf32>
    %90 = tpu.matmul %88, %89, %cst_37 {dimension_numbers = #tpu.dot_dimension_numbers<[2], [1], [1], [2], [0, 0, 0, 1, 1, 2], [0], [0]>} : vector<2x8x8xbf16>, vector<2x8x8xbf16>, vector<2x8x8xf32> -> vector<2x8x8xf32>
    "tpu.trace_stop"() : () -> ()
    %91 = tpu.concatenate %42, %58, %74, %90 in 2 : vector<2x8x8xf32>, vector<2x8x8xf32>, vector<2x8x8xf32>, vector<2x8x8xf32> -> vector<2x8x32xf32>
    %c0_38 = arith.constant 0 : index
    %c0_39 = arith.constant 0 : index
    %c0_40 = arith.constant 0 : index
    %92 = vector.load %arg10[%c0_38, %c0_39, %c0_40] : memref<2x8x32xf32, #tpu.memory_space<vmem>>, vector<2x8x32xf32>
    tpu.vector_store %arg10[%c0_38, %c0_39, %c0_40], %91 {strides = array<i32>} : memref<2x8x32xf32, #tpu.memory_space<vmem>>, vector<2x8x32xf32>,
    return
  }
  func.func @transform_0(%arg0: i32) -> (i32, i32, i32) {
    %c0_i32 = arith.constant 0 : i32
    %c0_i32_0 = arith.constant 0 : i32
    %c0_i32_1 = arith.constant 0 : i32
    return %arg0, %c0_i32, %c0_i32_0 : i32, i32, i32
  }
  func.func @transform_1(%arg0: i32) -> (i32, i32, i32) {
    %c0_i32 = arith.constant 0 : i32
    %c0_i32_0 = arith.constant 0 : i32
    %c0_i32_1 = arith.constant 0 : i32
    return %arg0, %c0_i32, %c0_i32_0 : i32, i32, i32
  }
  func.func @transform_2(%arg0: i32) -> (i32, i32, i32) {
    %c0_i32 = arith.constant 0 : i32
    %c0_i32_0 = arith.constant 0 : i32
    %c0_i32_1 = arith.constant 0 : i32
    return %arg0, %c0_i32, %c0_i32_0 : i32, i32, i32
  }
  func.func @transform_3(%arg0: i32) -> (i32, i32) {
    %c0_i32 = arith.constant 0 : i32
    %c0_i32_0 = arith.constant 0 : i32
    %c0_i32_1 = arith.constant 0 : i32
    return %c0_i32, %c0_i32_0 : i32, i32
  }
  func.func @transform_4(%arg0: i32) -> (i32, i32) {
    %c0_i32 = arith.constant 0 : i32
    %c0_i32_0 = arith.constant 0 : i32
    %c0_i32_1 = arith.constant 0 : i32
    return %c0_i32, %c0_i32_0 : i32, i32
  }
  func.func @transform_5(%arg0: i32) -> (i32, i32) {
    %c0_i32 = arith.constant 0 : i32
    %c0_i32_0 = arith.constant 0 : i32
    %c0_i32_1 = arith.constant 0 : i32
    return %c0_i32, %c0_i32_0 : i32, i32
  }
  func.func @transform_6(%arg0: i32) -> (i32, i32) {
    %c0_i32 = arith.constant 0 : i32
    %c0_i32_0 = arith.constant 0 : i32
    %c0_i32_1 = arith.constant 0 : i32
    return %c0_i32, %c0_i32_0 : i32, i32
  }
  func.func @transform_7(%arg0: i32) -> (i32, i32) {
    %c0_i32 = arith.constant 0 : i32
    %c0_i32_0 = arith.constant 0 : i32
    %c0_i32_1 = arith.constant 0 : i32
    return %c0_i32, %c0_i32_0 : i32, i32
  }
  func.func @transform_8(%arg0: i32) -> (i32, i32) {
    %c0_i32 = arith.constant 0 : i32
    %c0_i32_0 = arith.constant 0 : i32
    %c0_i32_1 = arith.constant 0 : i32
    return %c0_i32, %c0_i32_0 : i32, i32
  }
  func.func @transform_9(%arg0: i32) -> (i32, i32, i32) {
    %c0_i32 = arith.constant 0 : i32
    %c0_i32_0 = arith.constant 0 : i32
    %c0_i32_1 = arith.constant 0 : i32
    return %arg0, %c0_i32, %c0_i32_0 : i32, i32, i32
  }
}

</mosaic_0001>

<bundles_post_ra>
// kernel: tpu_custom_call.1
= control target key start
LH: loop header
LB: loop body
LE: loop exit
PB: predicated region body
PF: predicated region fallthrough
CT: control target
= control target key end

     0   :  { %s2968_s0 = inlined_call_operand.hbm [shape: bf16[4,8,32], index: 0, kind: input, shape index: {}]   ;;  %s2969_s1 = inlined_call_operand.hbm [shape: bf16[4,8,32], index: 1, kind: input, shape index: {}]   ;;  %s2970_s2 = inlined_call_operand.hbm [shape: bf16[4,8,32], index: 2, kind: input, shape index: {}]   ;;  %s2971_s3 = inlined_call_operand.hbm [shape: bf16[32,32], index: 3, kind: input, shape index: {}]   ;;  %s2972_s4 = inlined_call_operand.hbm [shape: bf16[32,32], index: 4, kind: input, shape index: {}]   ;;  %s2973_s5 = inlined_call_operand.hbm [shape: bf16[32,32], index: 5, kind: input, shape index: {}]   ;;  %s2974_s6 = inlined_call_operand.vmem [shape: f32[1,32], index: 6, kind: input, shape index: {}]   ;;  %s2975_s7 = inlined_call_operand.vmem [shape: f32[1,32], index: 7, kind: input, shape index: {}]   ;;  %s2976_s8 = inlined_call_operand.vmem [shape: f32[1,32], index: 8, kind: input, shape index: {}]   ;;  %s2977_s9 = inlined_call_operand.hbm [shape: f32[4,8,32], index: 9, kind: output, shape index: {}]  }
   0x1   :  { %2996 = sst [smem:[#allocation24_spill]] %s2969_s1 }
   0x2   :  { %2997 = sst [smem:[#allocation25_spill]] %s2971_s3 }
   0x3   :  { %2998 = sst [smem:[#allocation26_spill]] %s2972_s4 }
   0x4   :  { %2999 = sst [smem:[#allocation27_spill]] %s2973_s5 }
   0x5   :  { %3000 = sst [smem:[#allocation28_spill]] %s2977_s9 }
   0x6   :  { %14 = vsyncpa [#allocation3], 0 }
   0x7   :  { %16 = vsyncpa [#allocation3 + $0x1], 0 }
   0x8   :  { %17 = vsyncpa [#allocation6], 0 }
   0x9   :  { %19 = vsyncpa [#allocation6 + $0x1], 0 }
   0xa   :  { %20 = vsyncpa [#allocation9], 0 }
   0xb   :  { %21 = vsyncpa [#allocation12], 0 }
   0xc   :  { %22 = vsyncpa [#allocation4], 0 }
   0xd   :  { %24 = vsyncpa [#allocation4 + $0x1], 0  ;;  %s2464_s30 = smov 0   ;;  %s2466_s10 = smov 0  }
   0xe   :  { %s2468_s11 = smov 0   ;;  %s2470_s12 = smov 0  }
   0xf LB: > { %3001 = sst [smem:[#allocation19_spill]] %s2382_s30  ;;  %s2485_s13 = sadd.s32 4294967295, %s2394_s12   ;;  %s2394_s12 = sphi %s2470_s12, %s3037_s12   ;;  %s2390_s11 = sphi %s2468_s11, %s3041_s11   ;;  %s2386_s10 = sphi %s2466_s10, %s3040_s10   ;;  %s2382_s30 = sphi %s2464_s30, %s3039_s30  }
  0x10   : > { %3002 = sst [smem:[#allocation20_spill]] %s2394_s12  ;;  %s1781_s14 = sadd.s32 4294967294, %s2394_s12  }
  0x11   : > { %s2489_s15 = sadd.s32 1, %s2394_s12   ;;  %s37_s16 = sadd.s32 1, %s2390_s11 }
  0x12   : > { %3003 = sst [smem:[#allocation21_spill]] %s2489_s15  ;;  %s34_s17 = ssub.s32 %s2394_s12, %s2489_s15 }
  0x13   : > { %p44_p0 = scmp.ne.s32.totalorder %s2390_s11, %s2386_s10  ;;  %p35_p1 = scmp.eq.s32.totalorder %s34_s17, 0 }
  0x14   : > { %p45_p2 = scmp.eq.s32.totalorder %s2394_s12, 0  ;;  %p50_p3 = scmp.ne.s32.totalorder %s2386_s10, %s2382_s30 }
  0x15   : > { %p2978_p4 = scmp.eq.s32.totalorder %s2485_s13, 0  ;;  %p252_p7 = scmp.eq.s32.totalorder %s2485_s13, 1 }
  0x16   : > { %s2501_s18 = scalar_select %p35_p1, %s2390_s11, %s37_s16  }
  0x17   : > { %p2503_p5 = por %p45_p2, %p44_p0  ;;  %p2509_p6 = por %p2978_p4, %p50_p3 }
  0x18   : > { %3004 = sst [smem:[#allocation22_spill]] %s2501_s18  ;;  %p258_p8 = scmp.eq.s32.totalorder %s1781_s14, 1 }
  0x19   : > { %s3006_s20 = scalar_select %p2509_p6, 1, 0 }
  0x1a   : > { %p1782_p9 = scmp.ge.s32.totalorder %s2394_s12, 1  ;;  %p265_p10 = scmp.lt.s32.totalorder %s2394_s12, 3 }
  0x1b   : > { %p2516_p11 = por %p252_p7, %p44_p0  ;;  %p2520_p12 = por %p258_p8, %p50_p3 }
  0x1c   : > { %p2524_p13 = pnand %p1782_p9, %p265_p10  ;;  %s2396_s24 = smov [#allocation8]  }
  0x1d   : > { %s3007_s21 = scalar_select %p2516_p11, 1, 0 }
  0x1e   : > { %s3008_s22 = scalar_select %p2520_p12, 1, 0 }
  0x1f   : > { %s3010_s23 = scalar_select %p2524_p13, 1, 0 }
  0x20   : > { %3009 = sst [smem:[#allocation23_spill]] %s3008_s22  ;;  %p2037_p1 = pneg %p2524_p13 }
  0x21   : > { %s277_s25 = sshll.u32 %s2396_s24, 4  ;;  %p2064_p3 = scmp.lt.s32.totalorder %s2394_s12, 2  ;;  %s278_s25 = int_to_ptr.vmem [resolvable:$true] %s277_s25 }
  0x22   : > { %p2532_p2 = pnand %p2037_p1, %p2978_p4  ;;  %s2980_s27 = sand.u32 1, %s2390_s11  }
  0x23   : > { %s2541_s28 = sshll.u32 %s2980_s27, 3  ;;  %s2167_s29 = scalar_lea.vmem %s278_s25, 256 }
  0x24   : > { %s3011_s26 = scalar_select %p2532_p2, 1, 0 }
  0x25   : > { %p2990_p7 = pneg %p2532_p2  ;;  %p2168_p8 = scmp.ne.s32.totalorder %s278_s25, %s2167_s29 }
  0x26   : > { %p2175_p1 = scmp.lt.s32.totalorder %s278_s25, %s278_s25  ;;  %p2176_p4 = scmp.lt.s32.totalorder %s2167_s29, %s2167_s29 }
  0x27   : > { %p2170_p9 = pnand %p2168_p8, %p2990_p7 }
  0x28   : > { %p2177_p12 = por %p2176_p4, %p2175_p1 }
  0x29   : > { %p2171_p10 = pneg %p2170_p9 }
  0x2b   : > { %p2178_p11 = pnand %p2177_p12, %p2171_p10 }
  0x2d   : > { %2181 = shalt.err (!%p2178_p11)
}
  0x2e   : > { %s2985_s14 = smov 64   ;;  %s2987_s16 = smov 4  }
  0x2f   : > { %s3012_s3 = sld [smem:[#allocation25_spill]]  ;;  %s2557_s29 = sshll.u32 %s2394_s12, 7 }
  0x30   : > { %p2563_p4 = pnand %p2064_p3, %p2503_p5  ;;  %s347_s18 = sand.u32 1, %s2394_s12  }
  0x31   : > { %s3014_s1 = sld [smem:[#allocation24_spill]]  ;;  %s2577_s19 = scalar_lea.sflag [#allocation6], %s347_s18 }
  0x32   : > { %p2583_p11 = pneg %p2563_p4 }
  0x35   : > { %2040 = dma.hbm_to_vmem [thread:$0]  (!%p2532_p2), %s3012_s3, 256, %s278_s25, [#allocation9], %s2985_s14, %s2985_s14, %s2987_s16  }
  0x36   : > { %s351_s25 = scalar_lea.vmem [#allocation5], %s2541_s28 }
  0x37   : > { %s2572_s30 = scalar_lea.hbm %s3014_s1, %s2557_s29  ;;  %s358_s17 = sshll.u32 %s351_s25, 4  ;;  %s2575_s17 = int_to_ptr.vmem [resolvable:$true] %s358_s17 }
  0x38   : > { %s2182_s24 = scalar_lea.hbm %s2572_s30, 128  ;;  %s2187_s16 = scalar_lea.hbm %s3014_s1, 256 }
  0x39   : > { %p2183_p5 = scmp.ne.s32.totalorder %s2572_s30, %s2182_s24  ;;  %p2188_p8 = scmp.lt.s32.totalorder %s2572_s30, %s3014_s1 }
  0x3a   : > { %p2189_p9 = scmp.lt.s32.totalorder %s2187_s16, %s2182_s24 }
  0x3b   : > { %p2185_p12 = pnand %p2583_p11, %p2183_p5 }
  0x3c   : > { %p2190_p10 = por %p2189_p9, %p2188_p8 }
  0x3d   : > { %p2186_p3 = pneg %p2185_p12 }
  0x3f   : > { %p2191_p1 = pnand %p2190_p10, %p2186_p3 }
  0x41   : > { %2194 = shalt.err (!%p2191_p1)
}
  0x42   : > { %s2195_s18 = scalar_lea.vmem %s2575_s17, 128  ;;  %s2399_s12 = smov [#allocation5]  }
  0x43   : > { %p2196_p0 = scmp.ne.s32.totalorder %s2575_s17, %s2195_s18  ;;  %s2200_s15 = sshll.u32 %s2399_s12, 4  ;;  %s2201_s15 = int_to_ptr.vmem [resolvable:$false] %s2200_s15 }
  0x44   : > { %s2202_s22 = scalar_lea.vmem %s2201_s15, 256  ;;  %p2203_p7 = scmp.lt.s32.totalorder %s2575_s17, %s2201_s15 }
  0x45   : > { %p2198_p5 = pnand %p2196_p0, %p2583_p11  ;;  %p2204_p6 = scmp.lt.s32.totalorder %s2202_s22, %s2195_s18 }
  0x47   : > { %p2199_p12 = pneg %p2198_p5  ;;  %p2205_p13 = por %p2204_p6, %p2203_p7 }
  0x49   : > { %p2206_p2 = pnand %p2205_p13, %p2199_p12 }
  0x4b   : > { %2209 = shalt.err (!%p2206_p2)
}
  0x4c   : > { %s3016_s3 = smov 4   ;;  %s3017_s16 = smov 64  }
  0x4d   : > { %2053 = dma.hbm_to_vmem [thread:$0]  (!%p2563_p4), %s2572_s30, 128, %s2575_s17, %s2577_s19, %s3017_s16, %s3017_s16, %s3016_s3  }
  0x4e   : > { %s2400_s24 = smov [#allocation10]   ;;  %s2401_s12 = smov [#allocation11]  }
  0x4f   : > { %s290_s25 = sshll.u32 %s2400_s24, 4  ;;  %s303_s1 = sshll.u32 %s2401_s12, 4  ;;  %s291_s25 = int_to_ptr.vmem [resolvable:$true] %s290_s25  ;;  %s304_s1 = int_to_ptr.vmem [resolvable:$true] %s303_s1 }
  0x50   : > { %s2221_s15 = scalar_lea.vmem %s291_s25, 256  ;;  %p3018_p6 = scmp.ne.s32.totalorder %s3011_s26, 0 }
  0x51   : > { %p2222_p0 = scmp.ne.s32.totalorder %s291_s25, %s2221_s15  ;;  %p2229_p3 = scmp.lt.s32.totalorder %s291_s25, %s291_s25 }
  0x52   : > { %p3019_p13 = pneg %p3018_p6  ;;  %p2230_p8 = scmp.lt.s32.totalorder %s2221_s15, %s2221_s15 }
  0x54   : > { %p2224_p2 = pnand %p2222_p0, %p3019_p13  ;;  %p2231_p9 = por %p2230_p8, %p2229_p3 }
  0x56   : > { %p2225_p7 = pneg %p2224_p2 }
  0x58   : > { %p2232_p10 = pnand %p2231_p9, %p2225_p7 }
  0x5a   : > { %2235 = shalt.err (!%p2232_p10)
}
  0x5b   : > { %s3020_s4 = sld [smem:[#allocation26_spill]]  ;;  %s2247_s18 = scalar_lea.vmem %s304_s1, 256 }
  0x5c   : > { %p2248_p1 = scmp.ne.s32.totalorder %s304_s1, %s2247_s18  ;;  %p3021_p5 = pmov %p3019_p13 }
  0x5d   : > { %p2255_p13 = scmp.lt.s32.totalorder %s304_s1, %s304_s1  ;;  %p2256_p2 = scmp.lt.s32.totalorder %s2247_s18, %s2247_s18 }
  0x5e   : > { %p2250_p12 = pnand %p2248_p1, %p3021_p5 }
  0x5f   : > { %p2257_p7 = por %p2256_p2, %p2255_p13 }
  0x60   : > { %p2251_p0 = pneg %p2250_p12 }
  0x61   : > { %2043 = dma.hbm_to_vmem [thread:$0]  (!%p3018_p6), %s3020_s4, 256, %s291_s25, [#allocation9], %s3017_s16, %s3017_s16, %s3016_s3  }
  0x62   : > { %p2258_p3 = pnand %p2257_p7, %p2251_p0 }
  0x64   : > { %2261 = shalt.err (!%p2258_p3)
}
  0x65   : > { %s3022_s5 = sld [smem:[#allocation27_spill]]  ;;  %s2635_s15 = scalar_lea.hbm %s2968_s0, %s2557_s29 }
  0x66   : > { %s330_s26 = scalar_lea.vmem [#allocation2], %s2541_s28  ;;  %s2644_s22 = scalar_lea.hbm %s2970_s2, %s2557_s29 }
  0x67   : > { %s337_s30 = sshll.u32 %s330_s26, 4  ;;  %s3023_s24 = sand.u32 1, %s2390_s11   ;;  %s2638_s30 = int_to_ptr.vmem [resolvable:$true] %s337_s30 }
  0x68   : > { %s327_s4 = scalar_lea.sflag [#allocation3], %s3023_s24  ;;  %p2268_p10 = scmp.lt.s32.totalorder %s2635_s15, %s2968_s0 }
  0x6b   : > { %2046 = dma.hbm_to_vmem [thread:$0]  (!%p3018_p6), %s3022_s5, 256, %s304_s1, [#allocation12], %s3017_s16, %s3017_s16, %s3016_s3  }
  0x6c   : > { %s2262_s1 = scalar_lea.hbm %s2635_s15, 128  ;;  %s2267_s5 = scalar_lea.hbm %s2968_s0, 256 }
  0x6d   : > { %p2263_p6 = scmp.ne.s32.totalorder %s2635_s15, %s2262_s1  ;;  %p2269_p1 = scmp.lt.s32.totalorder %s2267_s5, %s2262_s1 }
  0x6f   : > { %p2265_p8 = pnand %p2263_p6, %p2583_p11  ;;  %p2270_p5 = por %p2269_p1, %p2268_p10 }
  0x71   : > { %p2266_p9 = pneg %p2265_p8 }
  0x73   : > { %p2271_p12 = pnand %p2270_p5, %p2266_p9 }
  0x75   : > { %2274 = shalt.err (!%p2271_p12)
}
  0x76   : > { %s2275_s29 = scalar_lea.vmem %s2638_s30, 128  ;;  %s2402_s17 = smov [#allocation2]  }
  0x77   : > { %p2276_p0 = scmp.ne.s32.totalorder %s2638_s30, %s2275_s29  ;;  %s2280_s18 = sshll.u32 %s2402_s17, 4  ;;  %s2281_s18 = int_to_ptr.vmem [resolvable:$false] %s2280_s18 }
  0x78   : > { %s2282_s24 = scalar_lea.vmem %s2281_s18, 256  ;;  %p2283_p7 = scmp.lt.s32.totalorder %s2638_s30, %s2281_s18 }
  0x79   : > { %p2278_p13 = pnand %p2276_p0, %p2583_p11  ;;  %p2284_p3 = scmp.lt.s32.totalorder %s2282_s24, %s2275_s29 }
  0x7b   : > { %p2279_p2 = pneg %p2278_p13  ;;  %p2285_p6 = por %p2284_p3, %p2283_p7 }
  0x7d   : > { %p2286_p8 = pnand %p2285_p6, %p2279_p2 }
  0x7f   : > { %2289 = shalt.err (!%p2286_p8)
}
  0x80   : > { %2050 = dma.hbm_to_vmem [thread:$0]  (!%p2563_p4), %s2635_s15, 128, %s2638_s30, %s327_s4, %s3017_s16, %s3017_s16, %s3016_s3  }
  0x81   : > { %s372_s5 = scalar_lea.vmem [#allocation7], %s2541_s28  ;;  %s2290_s1 = scalar_lea.hbm %s2644_s22, 128 }
  0x82   : > { %s379_s9 = sshll.u32 %s372_s5, 4  ;;  %p2291_p9 = scmp.ne.s32.totalorder %s2644_s22, %s2290_s1  ;;  %s380_s9 = int_to_ptr.vmem [resolvable:$true] %s379_s9 }
  0x83   : > { %s2295_s26 = scalar_lea.hbm %s2970_s2, 256  ;;  %p2296_p5 = scmp.lt.s32.totalorder %s2644_s22, %s2970_s2 }
  0x84   : > { %p2293_p10 = pnand %p2291_p9, %p2583_p11  ;;  %p2297_p12 = scmp.lt.s32.totalorder %s2295_s26, %s2290_s1 }
  0x86   : > { %p2294_p1 = pneg %p2293_p10  ;;  %p2298_p0 = por %p2297_p12, %p2296_p5 }
  0x88   : > { %p2299_p13 = pnand %p2298_p0, %p2294_p1 }
  0x8a   : > { %2302 = shalt.err (!%p2299_p13)
}
  0x8b   : > { %s2303_s4 = scalar_lea.vmem %s380_s9, 128  ;;  %s2403_s28 = smov [#allocation7]  }
  0x8c   : > { %p2304_p2 = scmp.ne.s32.totalorder %s380_s9, %s2303_s4  ;;  %s2308_s15 = sshll.u32 %s2403_s28, 4  ;;  %s2309_s15 = int_to_ptr.vmem [resolvable:$false] %s2308_s15 }
  0x8d   : > { %s2310_s30 = scalar_lea.vmem %s2309_s15, 256  ;;  %p2311_p6 = scmp.lt.s32.totalorder %s380_s9, %s2309_s15 }
  0x8e   : > { %p2306_p7 = pnand %p2304_p2, %p2583_p11  ;;  %p2312_p8 = scmp.lt.s32.totalorder %s2310_s30, %s2303_s4 }
  0x90   : > { %p2307_p3 = pneg %p2306_p7  ;;  %p2313_p9 = por %p2312_p8, %p2311_p6 }
  0x92   : > { %p2314_p10 = pnand %p2313_p9, %p2307_p3 }
  0x94   : > { %2317 = shalt.err (!%p2314_p10)
}
  0x95   : > { %2056 = dma.hbm_to_vmem [thread:$0]  (!%p2563_p4), %s2644_s22, 128, %s380_s9, %s2577_s19, %s3017_s16, %s3017_s16, %s3016_s3  }
  0x96   : > { %p3024_p11 = scmp.ne.s32.totalorder %s3010_s23, 0 }
  0x97   : > { %s2695_s14 = sand.u32 (!%p3024_p11), 1, %s2386_s10   ;;  %p3025_p1 = scmp.ne.s32.totalorder (!%p3024_p11), %s3006_s20, 0 }
  0x98   : > { %391 = sbr.rel (%p3024_p11) target bundleno = 2761 (0xac9), region = 56  ;;  %s2698_s18 = sshll.u32 (!%p3024_p11), %s2695_s14, 3 }
  0x99   : > { %s394_s24 = scalar_lea.sflag (!%p3024_p11), [#allocation3], %s2695_s14  ;;  %s397_s27 = scalar_lea.vmem (!%p3024_p11), [#allocation2], %s2698_s18 }
  0x9d   : > { %2361 = dma.done.wait (%p3025_p1), %s394_s24, 128  }
  0x9e   : > { %2363 = vsyncadd (%p3025_p1), %s394_s24, 4294967168  ;;  %s402_s23 = sand.u32 1, %s2485_s13   ;;  %s406_s3 = scalar_lea.vmem [#allocation5], %s2698_s18 }
  0x9f   : > { %s403_s19 = scalar_lea.sflag [#allocation6], %s402_s23 }
  0xa0   : > { %2365 = dma.done.wait (%p3025_p1), %s403_s19, 256  }
  0xa1   : > { %2367 = vsyncadd (%p3025_p1), %s403_s19, 4294967040  ;;  %s415_s16 = scalar_lea.vmem [#allocation7], %s2698_s18  ;;  %p3026_p4 = scmp.eq.s32.totalorder %s2485_s13, 0 }
  0xa3   : > { %2369 = dma.done.wait (%p3026_p4), [#allocation9], 512   ;;  %p3027_p5 = pmov %p3026_p4 }
  0xa4   : > { %p3028_p12 = pmov %p3026_p4 }
  0xa5   : > { %2371 = vsyncadd (%p3027_p5), [#allocation9], 4294966784 }
  0xa6   : > { %2373 = dma.done.wait (%p3028_p12), [#allocation12], 256   ;;  %p3029_p0 = pmov %p3026_p4 }
  0xa7   : > { %v2404_v0 = vmov 0.0   ;;  %vm2405_vm0 = vmmov 0   ;;  %v2115_v1 = vld [vmem:[#allocation10 + $0x8] sm:$0xff]   ;;  %v2116_v2 = vld [vmem:[#allocation8 + $0x8] sm:$0xff]   ;;  %v2117_v3 = vld [vmem:[#allocation10] sm:$0xff]   ;;  %vm511_vm1 = vcmask 261120  }
  0xa8   : > { %2375 = vsyncadd (%p3029_p0), [#allocation12], 4294967040  ;;  %1905 = vmatprep.subr.bf16.mxu1 %v2404_v0  ;;  %1897 = vmatprep.subr.bf16.mxu0 %v2404_v0  ;;  %v2118_v4 = vld [vmem:[#allocation8] sm:$0xff]   ;;  %v2120_v6 = vld [vmem:[%s397_s27] sm:$0xff]   ;;  %vm718_vm2 = vcmask 64512   ;;  %s2406_s1 = smov 120  }
  0xa9   : > { %1909 = vmatprep.mubr.msk.bf16.mxu1 %vm2405_vm0, %v2404_v0  ;;  %1901 = vmatprep.mubr.msk.bf16.mxu0 %vm2405_vm0, %v2404_v0  ;;  %v2119_v5 = vld [vmem:[%s406_s3] sm:$0xff]   ;;  %v2123_v9 = vld [vmem:[%s415_s16] sm:$0xff]   ;;  %vm838_vm3 = vcmask 1043456   ;;  %s2407_s26 = smov 112   ;;  %s2408_s29 = smov 104   ;;  %vm1617_vm4 = vcmask 195584  }
  0xaa   : > { %1906 = vmatpush3.bf16.msra.mxu1 %v2115_v1  ;;  %1898 = vmatpush3.bf16.msra.mxu0 %v2116_v2  ;;  %v2121_v7 = vld [vmem:[#allocation11 + $0x8] sm:$0xff]   ;;  %v2122_v8 = vld [vmem:[#allocation11] sm:$0xff]   ;;  %v1809_v10 = vld [vmem:[%s2975_s7] ss:$0 sm:$0xff]  ;;  %s2409_s17 = smov 8   ;;  %s2410_s4 = smov 16  }
  0xab   : > { %1907 = vmatprep.subr.bf16.mxu1 %v2404_v0  ;;  %1899 = vmatprep.subr.bf16.mxu0 %v2404_v0  ;;  %v1804_v15 = vld [vmem:[%s2974_s6] ss:$0 sm:$0xff]  ;;  %s2411_s28 = smov 24   ;;  %s1803_s15 = sshll.u32 %s2695_s14, 4  ;;  %vm1614_vm5 = vcmask 130048  }
  0xac   : > { %v1814_v30 = vld [vmem:[%s2976_s8] ss:$0 sm:$0xff]  ;;  %s471_s30 = scalar_lea.vmem [#allocation13], %s1803_s15  ;;  %s1855_s24 = sshll.u32 %s2485_s13, 8 }
  0xad   : > { %s1636_s18 = sshll.u32 %s471_s30, 4  ;;  %s3030_s19 = sld [smem:[#allocation28_spill]]  ;;  %s2917_s18 = int_to_ptr.vmem [resolvable:$true] %s1636_s18 }
  0xae   : > { %1908 = vmatpush3.bf16.msra.mxu1 %v2117_v3  ;;  %1900 = vmatpush3.bf16.msra.mxu0 %v2118_v4  ;;  %s1623_s13 = scalar_lea.sflag [#allocation4], %s2695_s14  ;;  %s2318_s16 = scalar_lea.vmem %s2917_s18, 256 }
  0xaf   : > { %1921 = vmatprep.subr.bf16.mxu1 %v2404_v0  ;;  %1913 = vmatprep.subr.bf16.mxu0 %v2404_v0  ;;  %p2319_p13 = scmp.ne.s32.totalorder %s2917_s18, %s2318_s16  ;;  %p3031_p2 = scmp.ne.s32.totalorder %s3007_s21, 0 }
  0xb0   : > { %s2412_s20 = smov [#allocation13]  }
  0xb1   : > { %1910 = vmatmul.mubr.msk.bf16.vlgmr.msra.gmra.mxu1 %vm511_vm1, %v2119_v5  ;;  %1902 = vmatmul.mubr.msk.bf16.vlgmr.msra.gmra.mxu0 %vm511_vm1, %v2120_v6  ;;  %p2320_p7 = pnand %p2319_p13, %p3031_p2  ;;  %s2322_s22 = sshll.u32 %s2412_s20, 4  ;;  %s2323_s22 = int_to_ptr.vmem [resolvable:$false] %s2322_s22 }
  0xb2   : > { %1923 = vmatprep.mubr.msk.bf16.mxu1 %vm2405_vm0, %v2404_v0  ;;  %1914 = vmatpush3.bf16.msra.mxu0 %v2121_v7  ;;  %s2324_s5 = scalar_lea.vmem %s2323_s22, 512  ;;  %p2325_p6 = scmp.lt.s32.totalorder %s2917_s18, %s2323_s22 }
  0xb3   : > { %1917 = vmatprep.mubr.msk.bf16.mxu0 %vm2405_vm0, %v2404_v0  ;;  %1915 = vmatprep.subr.bf16.mxu0 %v2404_v0  ;;  %s2922_s3 = scalar_lea.hbm %s3030_s19, %s1855_s24  ;;  %p2321_p3 = pneg %p2320_p7 }
  0xb4   : > { %p2326_p8 = scmp.lt.s32.totalorder %s2324_s5, %s2318_s16 }
  0xb6   : > { %1916 = vmatpush3.bf16.msra.mxu0 %v2122_v8  ;;  %p2327_p9 = por %p2326_p8, %p2325_p6 }
  0xb7   : > { %1927 = vmatprep.subr.bf16.mxu0 %v2404_v0 }
  0xb8   : > { %p2328_p10 = pnand %p2327_p9, %p2321_p3 }
  0xb9   : > { %1918 = vmatmul.mubr.msk.bf16.vlgmr.msra.gmra.mxu0 %vm511_vm1, %v2123_v9 }
  0xba   : > { %1929 = vmatprep.mubr.msk.bf16.mxu0 %vm2405_vm0, %v2404_v0 }
 0x171   : > { %v622_v11 = vpop.f32.mrf.mxu1  ;;  %v549_v13 = vpop.f32.mrf.mxu0 }
 0x172   : > { %v623_v12 = vadd.f32 %v1809_v10, %v622_v11  ;;  %v550_v19 = vadd.f32 %v1804_v15, %v549_v13 }
 0x173   : > { %v1911_v14 = vpop.f32.mrf.mxu1  ;;  %v1903_v17 = vpop.f32.mrf.mxu0 }
 0x174   : > { %v2750_v16 = vpack.c.bf16 %v623_v12, %v623_v12  ;;  %v2757_v26 = vpack.c.bf16 %v550_v19, %v550_v19 }
 0x175   : > { %v625_v18 = vpop.f32.mrf.mxu1  ;;  %v552_v22 = vpop.f32.mrf.mxu0 }
 0x176   : > { %v626_v20 = vadd.f32 %v1809_v10, %v625_v18  ;;  %v723_v21 = vsel %vm718_vm2, %v2750_v16, 0  ;;  %v553_v28 = vadd.f32 %v1804_v15, %v552_v22 }
 0x177   : > { %v1912_v23 = vpop.f32.mrf.mxu1  ;;  %1922 = vmatpush3.bf16.xpose.msra.mxu1 %v723_v21  ;;  %v1904_v25 = vpop.f32.mrf.mxu0 }
 0x178   : > { %v2754_v24 = vpack.c.bf16 %v626_v20, %v626_v20  ;;  %1933 = vmatprep.subr.bf16.mxu1 %v2404_v0  ;;  %v2768_v29 = vpack.c.bf16 %v553_v28, %v553_v28 }
 0x179   : > { %v695_v31 = vpop.f32.mrf.mxu0 }
 0x17a   : > { %980 = vrot.lane.b32.xlu1 %v2754_v24, %s2406_s1  ;;  %v769_v27 = vsel %vm718_vm2, %v2754_v24, 0  ;;  %v696_v33 = vadd.f32 %v1814_v30, %v695_v31 }
 0x17b   : > { %1928 = vmatpush3.bf16.xpose.msra.mxu0 %v769_v27  ;;  %v1919_v32 = vpop.f32.mrf.mxu0 }
 0x17c   : > { %1939 = vmatprep.subr.bf16.mxu0 %v2404_v0  ;;  %v2777_v37 = vpack.c.bf16 %v696_v33, %v696_v33 }
 0x17d   : > { %v698_v34 = vpop.f32.mrf.mxu0 }
 0x17e   : > { %1924 = vmatmul.mubr.msk.bf16.vlgmr.msra.gmra.mxu1 %vm718_vm2, %v2757_v26  ;;  %v699_v35 = vadd.f32 %v1814_v30, %v698_v34  ;;  %v840_v39 = vsel %vm838_vm3, %v2777_v37, 0 }
 0x17f   : > { %1935 = vmatprep.mubr.msk.bf16.mxu1 %vm2405_vm0, %v2404_v0  ;;  %v1920_v36 = vpop.f32.mrf.mxu0  ;;  %1934 = vmatpush3.bf16.msra.mxu1 %v840_v39 }
 0x180   : > { %v2779_v38 = vpack.c.bf16 %v699_v35, %v699_v35  ;;  %1945 = vmatprep.subr.bf16.mxu1 %v2404_v0 }
 0x182   : > { %1930 = vmatmul.mubr.msk.bf16.vlgmr.msra.gmra.mxu0 %vm718_vm2, %v2768_v29  ;;  %v886_v40 = vsel %vm838_vm3, %v2779_v38, 0 }
 0x183   : > { %1941 = vmatprep.mubr.msk.bf16.mxu0 %vm2405_vm0, %v2404_v0  ;;  %1940 = vmatpush3.bf16.msra.mxu0 %v886_v40 }
 0x184   : > { %1951 = vmatprep.subr.bf16.mxu0 %v2404_v0 }
 0x1ec   : > { %v981_v61 = vpop.permute.xlu1 %980 }
 0x1ed   : > { %v986_v9 = vsel %vm718_vm2, %v981_v61, 0 }
 0x23e   : > { %v759_v41 = vpop.f32.mrf.mxu1 }
 0x23f   : > { %v811_v42 = vsel %vm718_vm2, %v759_v41, -inf }
 0x240   : > { %812 = vmax.xlane.f32.xlu0 %v811_v42  ;;  %v1925_v43 = vpop.f32.mrf.mxu1 }
 0x242   : > { %v762_v44 = vpop.f32.mrf.mxu1  ;;  %v805_v45 = vpop.f32.mrf.mxu0 }
 0x243   : > { %v814_v46 = vsel %vm718_vm2, %v805_v45, -inf }
 0x244   : > { %v1926_v47 = vpop.f32.mrf.mxu1  ;;  %815 = vmax.xlane.f32.xlu0 %v814_v46  ;;  %v1931_v48 = vpop.f32.mrf.mxu0 }
 0x246   : > { %v808_v49 = vpop.f32.mrf.mxu0 }
 0x248   : > { %v1932_v50 = vpop.f32.mrf.mxu0 }
 0x25a   : > { %930 = vrot.lane.b32.xlu0 %v2750_v16, %s2406_s1 }
 0x2c9   : > { %v813_v51 = vpop.xlane.xlu0 %812 }
 0x2ca   : > { %v817_v52 = vsub.f32 %v759_v41, %v813_v51 }
 0x2cc   : > { %v819_v53 = vmul.f32 1.442695, %v817_v52 }
 0x2cd   : > { %v816_v54 = vpop.xlane.xlu0 %815 }
 0x2ce   : > { %2124 = vpow2.f32 %v819_v53  ;;  %v818_v55 = vsub.f32 %v805_v45, %v816_v54 }
 0x2d0   : > { %v821_v56 = vmul.f32 1.442695, %v818_v55 }
 0x2d1   : > { %v931_v3 = vpop.permute.xlu0 %930 }
 0x2d2   : > { %2126 = vpow2.f32 %v821_v56  ;;  %v936_v6 = vsel %vm718_vm2, %v931_v3, 0 }
 0x2db   : > { %v2125_v57 = vpop.eup %2124 }
 0x2dc   : > { %v823_v58 = vsel %vm718_vm2, %v2125_v57, 0.0 }
 0x2dd   : > { %824 = vadd.xlane.f32.xlu1 %v823_v58 }
 0x2df   : > { %v2127_v59 = vpop.eup %2126 }
 0x2e0   : > { %v826_v60 = vsel %vm718_vm2, %v2127_v59, 0.0 }
 0x2e1   : > { %827 = vadd.xlane.f32.xlu1 %v826_v60 }
 0x2f2   : > { %928 = vrot.lane.b32.xlu1 %v2757_v26, %s2406_s1 }
 0x2f6   : > { %978 = vrot.lane.b32.xlu1 %v2768_v29, %s2406_s1 }
 0x366   : > { %v825_v62 = vpop.xlane.xlu1 %824 }
 0x367   : > { %2128 = vrcp.f32 %v825_v62 }
 0x36a   : > { %v828_v63 = vpop.xlane.xlu1 %827 }
 0x36b   : > { %2130 = vrcp.f32 %v828_v63 }
 0x36e   : > { %v929_v10 = vpop.permute.xlu1 %928 }
 0x372   : > { %v979_v11 = vpop.permute.xlu1 %978 }
 0x374   : > { %v2129_v1 = vpop.eup %2128 }
 0x375   : > { %v831_v2 = vmul.f32 %v2129_v1, %v2125_v57 }
 0x377   : > { %v833_v4 = vpack.c.bf16 %v831_v2, %v831_v2 }
 0x378   : > { %v2131_v5 = vpop.eup %2130 }
 0x379   : > { %1936 = vmatmul.mubr.msk.bf16.vlgmr.msra.gmra.mxu1 %vm718_vm2, %v833_v4  ;;  %v832_v7 = vmul.f32 %v2131_v5, %v2127_v59 }
 0x37a   : > { %1946 = vmatpush3.bf16.xpose.msra.mxu1 %v936_v6  ;;  %1947 = vmatprep.mubr.msk.bf16.mxu1 %vm2405_vm0, %v2404_v0 }
 0x37b   : > { %v834_v8 = vpack.c.bf16 %v832_v7, %v832_v7  ;;  %1957 = vmatprep.subr.bf16.mxu1 %v2404_v0 }
 0x37d   : > { %1942 = vmatmul.mubr.msk.bf16.vlgmr.msra.gmra.mxu0 %vm718_vm2, %v834_v8 }
 0x37e   : > { %1952 = vmatpush3.bf16.xpose.msra.mxu0 %v986_v9  ;;  %1953 = vmatprep.mubr.msk.bf16.mxu0 %vm2405_vm0, %v2404_v0 }
 0x37f   : > { %1963 = vmatprep.subr.bf16.mxu0 %v2404_v0 }
 0x381   : > { %1948 = vmatmul.mubr.msk.bf16.vlgmr.msra.gmra.mxu1 %vm718_vm2, %v929_v10 }
 0x382   : > { %1959 = vmatprep.mubr.msk.bf16.mxu1 %vm2405_vm0, %v2404_v0 }
 0x385   : > { %1954 = vmatmul.mubr.msk.bf16.vlgmr.msra.gmra.mxu0 %vm718_vm2, %v979_v11 }
 0x386   : > { %1965 = vmatprep.mubr.msk.bf16.mxu0 %vm2405_vm0, %v2404_v0 }
 0x439   : > { %v2813_v12 = vpop.f32.mrf.mxu1 }
 0x43b   : > { %v1937_v13 = vpop.f32.mrf.mxu1 }
 0x43d   : > { %v879_v14 = vpop.f32.mrf.mxu1  ;;  %v2815_v15 = vpop.f32.mrf.mxu0 }
 0x43f   : > { %v1938_v17 = vpop.f32.mrf.mxu1  ;;  %v1943_v18 = vpop.f32.mrf.mxu0 }
 0x441   : > { %v925_v19 = vpop.f32.mrf.mxu0  ;;  %v972_v20 = vpop.f32.mrf.mxu1 }
 0x442   : > { %v1028_v21 = vsel %vm718_vm2, %v972_v20, -inf }
 0x443   : > { %1029 = vmax.xlane.f32.xlu0 %v1028_v21  ;;  %v1944_v22 = vpop.f32.mrf.mxu0  ;;  %v1949_v23 = vpop.f32.mrf.mxu1 }
 0x445   : > { %v975_v25 = vpop.f32.mrf.mxu1  ;;  %v1022_v27 = vpop.f32.mrf.mxu0 }
 0x446   : > { %v1031_v28 = vsel %vm718_vm2, %v1022_v27, -inf }
 0x447   : > { %v1950_v30 = vpop.f32.mrf.mxu1  ;;  %1032 = vmax.xlane.f32.xlu1 %v1031_v28  ;;  %v1955_v31 = vpop.f32.mrf.mxu0 }
 0x449   : > { %v1025_v32 = vpop.f32.mrf.mxu0 }
 0x44b   : > { %v1956_v33 = vpop.f32.mrf.mxu0 }
 0x458   : > { %1100 = vrot.lane.b32.xlu1 %v2779_v38, %s2406_s1 }
 0x45c   : > { %1150 = vrot.lane.b32.xlu1 %v2750_v16, %s2407_s26 }
 0x460   : > { %1200 = vrot.lane.b32.xlu1 %v2754_v24, %s2407_s26 }
 0x464   : > { %1198 = vrot.lane.b32.xlu1 %v2768_v29, %s2407_s26 }
 0x4cc   : > { %v1030_v34 = vpop.xlane.xlu0 %1029 }
 0x4cd   : > { %v1034_v35 = vsub.f32 %v972_v20, %v1030_v34 }
 0x4cf   : > { %v1036_v36 = vmul.f32 1.442695, %v1034_v35 }
 0x4d0   : > { %v1033_v39 = vpop.xlane.xlu1 %1032 }
 0x4d1   : > { %2132 = vpow2.f32 %v1036_v36  ;;  %v1035_v40 = vsub.f32 %v1022_v27, %v1033_v39 }
 0x4d3   : > { %v1038_v41 = vmul.f32 1.442695, %v1035_v40 }
 0x4d4   : > { %v1101_v42 = vpop.permute.xlu1 %1100 }
 0x4d5   : > { %2134 = vpow2.f32 %v1038_v41  ;;  %v1106_v43 = vsel %vm838_vm3, %v1101_v42, 0 }
 0x4d6   : > { %1964 = vmatpush3.bf16.msra.mxu0 %v1106_v43 }
 0x4d7   : > { %1975 = vmatprep.subr.bf16.mxu0 %v2404_v0 }
 0x4d8   : > { %v1151_v53 = vpop.permute.xlu1 %1150 }
 0x4d9   : > { %v1156_v57 = vsel %vm718_vm2, %v1151_v53, 0 }
 0x4dc   : > { %v1201_v59 = vpop.permute.xlu1 %1200 }
 0x4dd   : > { %v1206_v61 = vsel %vm718_vm2, %v1201_v59, 0 }
 0x4de   : > { %v2133_v44 = vpop.eup %2132 }
 0x4df   : > { %v1040_v45 = vsel %vm718_vm2, %v2133_v44, 0.0 }
 0x4e0   : > { %1041 = vadd.xlane.f32.xlu0 %v1040_v45  ;;  %v1199_v63 = vpop.permute.xlu1 %1198 }
 0x4e2   : > { %v2135_v46 = vpop.eup %2134 }
 0x4e3   : > { %v1043_v47 = vsel %vm718_vm2, %v2135_v46, 0.0 }
 0x4e4   : > { %1044 = vadd.xlane.f32.xlu0 %v1043_v47 }
 0x4fa   : > { %1052 = vrot.lane.b32.xlu0 %v2777_v37, %s2406_s1 }
 0x4fe   : > { %1148 = vrot.lane.b32.xlu0 %v2757_v26, %s2407_s26 }
 0x569   : > { %v1042_v48 = vpop.xlane.xlu0 %1041 }
 0x56a   : > { %2136 = vrcp.f32 %v1042_v48 }
 0x56d   : > { %v1045_v49 = vpop.xlane.xlu0 %1044 }
 0x56e   : > { %2138 = vrcp.f32 %v1045_v49 }
 0x571   : > { %v1053_v50 = vpop.permute.xlu0 %1052 }
 0x572   : > { %v1058_v51 = vsel %vm838_vm3, %v1053_v50, 0 }
 0x573   : > { %1958 = vmatpush3.bf16.msra.mxu1 %v1058_v51 }
 0x574   : > { %1969 = vmatprep.subr.bf16.mxu1 %v2404_v0 }
 0x575   : > { %v1149_v62 = vpop.permute.xlu0 %1148 }
 0x577   : > { %v2137_v52 = vpop.eup %2136 }
 0x578   : > { %v1048_v54 = vmul.f32 %v2137_v52, %v2133_v44 }
 0x57a   : > { %v1050_v55 = vpack.c.bf16 %v1048_v54, %v1048_v54 }
 0x57b   : > { %v2139_v56 = vpop.eup %2138 }
 0x57c   : > { %1960 = vmatmul.mubr.msk.bf16.vlgmr.msra.gmra.mxu1 %vm718_vm2, %v1050_v55  ;;  %v1049_v58 = vmul.f32 %v2139_v56, %v2135_v46 }
 0x57d   : > { %1970 = vmatpush3.bf16.xpose.msra.mxu1 %v1156_v57  ;;  %1971 = vmatprep.mubr.msk.bf16.mxu1 %vm2405_vm0, %v2404_v0 }
 0x57e   : > { %v1051_v60 = vpack.c.bf16 %v1049_v58, %v1049_v58  ;;  %1981 = vmatprep.subr.bf16.mxu1 %v2404_v0 }
 0x580   : > { %1966 = vmatmul.mubr.msk.bf16.vlgmr.msra.gmra.mxu0 %vm718_vm2, %v1051_v60 }
 0x581   : > { %1976 = vmatpush3.bf16.xpose.msra.mxu0 %v1206_v61  ;;  %1977 = vmatprep.mubr.msk.bf16.mxu0 %vm2405_vm0, %v2404_v0 }
 0x582   : > { %1987 = vmatprep.subr.bf16.mxu0 %v2404_v0 }
 0x584   : > { %1972 = vmatmul.mubr.msk.bf16.vlgmr.msra.gmra.mxu1 %vm718_vm2, %v1149_v62 }
 0x585   : > { %1983 = vmatprep.mubr.msk.bf16.mxu1 %vm2405_vm0, %v2404_v0 }
 0x588   : > { %1978 = vmatmul.mubr.msk.bf16.vlgmr.msra.gmra.mxu0 %vm718_vm2, %v1199_v63 }
 0x589   : > { %1989 = vmatprep.mubr.msk.bf16.mxu0 %vm2405_vm0, %v2404_v0 }
 0x63c   : > { %v2853_v1 = vpop.f32.mrf.mxu1 }
 0x63e   : > { %v1961_v2 = vpop.f32.mrf.mxu1 }
 0x640   : > { %v1097_v3 = vpop.f32.mrf.mxu1  ;;  %v2855_v4 = vpop.f32.mrf.mxu0 }
 0x642   : > { %v1962_v5 = vpop.f32.mrf.mxu1  ;;  %v1967_v6 = vpop.f32.mrf.mxu0 }
 0x644   : > { %v1145_v7 = vpop.f32.mrf.mxu0  ;;  %v1192_v8 = vpop.f32.mrf.mxu1 }
 0x645   : > { %v1248_v9 = vsel %vm718_vm2, %v1192_v8, -inf }
 0x646   : > { %1249 = vmax.xlane.f32.xlu0 %v1248_v9  ;;  %v1968_v10 = vpop.f32.mrf.mxu0  ;;  %v1973_v11 = vpop.f32.mrf.mxu1 }
 0x648   : > { %v1195_v13 = vpop.f32.mrf.mxu1  ;;  %v1242_v14 = vpop.f32.mrf.mxu0 }
 0x649   : > { %v1251_v17 = vsel %vm718_vm2, %v1242_v14, -inf }
 0x64a   : > { %v1974_v18 = vpop.f32.mrf.mxu1  ;;  %1252 = vmax.xlane.f32.xlu1 %v1251_v17  ;;  %v1979_v19 = vpop.f32.mrf.mxu0 }
 0x64c   : > { %v1245_v20 = vpop.f32.mrf.mxu0 }
 0x64e   : > { %v1980_v21 = vpop.f32.mrf.mxu0 }
 0x65b   : > { %1320 = vrot.lane.b32.xlu1 %v2779_v38, %s2407_s26 }
 0x65f   : > { %1370 = vrot.lane.b32.xlu1 %v2750_v16, %s2408_s29 }
 0x663   : > { %1420 = vrot.lane.b32.xlu1 %v2754_v24, %s2408_s29 }
 0x667   : > { %1418 = vrot.lane.b32.xlu1 %v2768_v29, %s2408_s29 }
 0x6cf   : > { %v1250_v22 = vpop.xlane.xlu0 %1249 }
 0x6d0   : > { %v1254_v23 = vsub.f32 %v1192_v8, %v1250_v22 }
 0x6d2   : > { %v1256_v25 = vmul.f32 1.442695, %v1254_v23 }
 0x6d3   : > { %v1253_v27 = vpop.xlane.xlu1 %1252 }
 0x6d4   : > { %2140 = vpow2.f32 %v1256_v25  ;;  %v1255_v28 = vsub.f32 %v1242_v14, %v1253_v27 }
 0x6d6   : > { %v1258_v30 = vmul.f32 1.442695, %v1255_v28 }
 0x6d7   : > { %v1321_v31 = vpop.permute.xlu1 %1320 }
 0x6d8   : > { %2142 = vpow2.f32 %v1258_v30  ;;  %v1326_v32 = vsel %vm838_vm3, %v1321_v31, 0 }
 0x6d9   : > { %1988 = vmatpush3.bf16.msra.mxu0 %v1326_v32 }
 0x6da   : > { %1999 = vmatprep.subr.bf16.mxu0 %v2404_v0 }
 0x6db   : > { %v1371_v41 = vpop.permute.xlu1 %1370 }
 0x6dc   : > { %v1376_v45 = vsel %vm718_vm2, %v1371_v41, 0 }
 0x6df   : > { %v1421_v46 = vpop.permute.xlu1 %1420 }
 0x6e0   : > { %v1426_v48 = vsel %vm718_vm2, %v1421_v46, 0 }
 0x6e1   : > { %v2141_v16 = vpop.eup %2140 }
 0x6e2   : > { %v1260_v24 = vsel %vm718_vm2, %v2141_v16, 0.0 }
 0x6e3   : > { %1261 = vadd.xlane.f32.xlu0 %v1260_v24  ;;  %v1419_v50 = vpop.permute.xlu1 %1418 }
 0x6e5   : > { %v2143_v33 = vpop.eup %2142 }
 0x6e6   : > { %v1263_v29 = vsel %vm718_vm2, %v2143_v33, 0.0 }
 0x6e7   : > { %1264 = vadd.xlane.f32.xlu0 %v1263_v29 }
 0x6fd   : > { %1272 = vrot.lane.b32.xlu0 %v2777_v37, %s2407_s26 }
 0x701   : > { %1368 = vrot.lane.b32.xlu0 %v2757_v26, %s2408_s29 }
 0x76c   : > { %v1262_v34 = vpop.xlane.xlu0 %1261 }
 0x76d   : > { %2144 = vrcp.f32 %v1262_v34 }
 0x770   : > { %v1265_v35 = vpop.xlane.xlu0 %1264 }
 0x771   : > { %2146 = vrcp.f32 %v1265_v35 }
 0x774   : > { %v1273_v36 = vpop.permute.xlu0 %1272 }
 0x775   : > { %v1278_v39 = vsel %vm838_vm3, %v1273_v36, 0 }
 0x776   : > { %1982 = vmatpush3.bf16.msra.mxu1 %v1278_v39 }
 0x777   : > { %1993 = vmatprep.subr.bf16.mxu1 %v2404_v0 }
 0x778   : > { %v1369_v49 = vpop.permute.xlu0 %1368 }
 0x77a   : > { %v2145_v40 = vpop.eup %2144 }
 0x77b   : > { %v1268_v42 = vmul.f32 %v2145_v40, %v2141_v16 }
 0x77d   : > { %v1270_v43 = vpack.c.bf16 %v1268_v42, %v1268_v42 }
 0x77e   : > { %v2147_v44 = vpop.eup %2146 }
 0x77f   : > { %1984 = vmatmul.mubr.msk.bf16.vlgmr.msra.gmra.mxu1 %vm718_vm2, %v1270_v43  ;;  %v1269_v26 = vmul.f32 %v2147_v44, %v2143_v33 }
 0x780   : > { %1994 = vmatpush3.bf16.xpose.msra.mxu1 %v1376_v45  ;;  %1995 = vmatprep.mubr.msk.bf16.mxu1 %vm2405_vm0, %v2404_v0 }
 0x781   : > { %v1271_v47 = vpack.c.bf16 %v1269_v26, %v1269_v26  ;;  %2005 = vmatprep.subr.bf16.mxu1 %v2404_v0 }
 0x783   : > { %1990 = vmatmul.mubr.msk.bf16.vlgmr.msra.gmra.mxu0 %vm718_vm2, %v1271_v47 }
 0x784   : > { %2000 = vmatpush3.bf16.xpose.msra.mxu0 %v1426_v48  ;;  %2001 = vmatprep.mubr.msk.bf16.mxu0 %vm2405_vm0, %v2404_v0 }
 0x785   : > { %2011 = vmatprep.subr.bf16.mxu0 %v2404_v0 }
 0x787   : > { %1996 = vmatmul.mubr.msk.bf16.vlgmr.msra.gmra.mxu1 %vm718_vm2, %v1369_v49 }
 0x788   : > { %2007 = vmatprep.mubr.msk.bf16.mxu1 %vm2405_vm0, %v2404_v0 }
 0x78b   : > { %2002 = vmatmul.mubr.msk.bf16.vlgmr.msra.gmra.mxu0 %vm718_vm2, %v1419_v50 }
 0x78c   : > { %2013 = vmatprep.mubr.msk.bf16.mxu0 %vm2405_vm0, %v2404_v0 }
 0x83f   : > { %v1314_v51 = vpop.f32.mrf.mxu1 }
 0x841   : > { %v1985_v52 = vpop.f32.mrf.mxu1 }
 0x843   : > { %v1317_v53 = vpop.f32.mrf.mxu1  ;;  %v1362_v54 = vpop.f32.mrf.mxu0 }
 0x845   : > { %v1986_v55 = vpop.f32.mrf.mxu1  ;;  %v1991_v56 = vpop.f32.mrf.mxu0 }
 0x847   : > { %v1365_v57 = vpop.f32.mrf.mxu0  ;;  %v1412_v58 = vpop.f32.mrf.mxu1 }
 0x848   : > { %v1468_v59 = vsel %vm718_vm2, %v1412_v58, -inf }
 0x849   : > { %1469 = vmax.xlane.f32.xlu0 %v1468_v59  ;;  %v1992_v60 = vpop.f32.mrf.mxu0  ;;  %v1997_v61 = vpop.f32.mrf.mxu1 }
 0x84b   : > { %v1415_v62 = vpop.f32.mrf.mxu1  ;;  %v1462_v63 = vpop.f32.mrf.mxu0 }
 0x84c   : > { %v1471_v2 = vsel %vm718_vm2, %v1462_v63, -inf }
 0x84d   : > { %v1998_v3 = vpop.f32.mrf.mxu1  ;;  %1472 = vmax.xlane.f32.xlu1 %v1471_v2  ;;  %v2003_v0 = vpop.f32.mrf.mxu0 }
 0x84f   : > { %v1465_v5 = vpop.f32.mrf.mxu0 }
 0x851   : > { %v2004_v6 = vpop.f32.mrf.mxu0 }
 0x85e   : > { %1540 = vrot.lane.b32.xlu1 %v2779_v38, %s2408_s29 }
 0x862   : > { %1590 = vrot.lane.b32.xlu1 %v2853_v1, %s2409_s17 }
 0x866   : > { %1592 = vrot.lane.b32.xlu1 %v2855_v4, %s2409_s17 }
 0x86a   : > { %1600 = vrot.lane.b32.xlu1 %v1362_v54, %s2410_s4 }
 0x8d2   : > { %v1470_v7 = vpop.xlane.xlu0 %1469 }
 0x8d3   : > { %v1474_v8 = vsub.f32 %v1412_v58, %v1470_v7 }
 0x8d5   : > { %v1476_v9 = vmul.f32 1.442695, %v1474_v8 }
 0x8d6   : > { %v1473_v10 = vpop.xlane.xlu1 %1472 }
 0x8d7   : > { %2148 = vpow2.f32 %v1476_v9  ;;  %v1475_v11 = vsub.f32 %v1462_v63, %v1473_v10 }
 0x8d9   : > { %v1478_v13 = vmul.f32 1.442695, %v1475_v11 }
 0x8da   : > { %v1541_v14 = vpop.permute.xlu1 %1540 }
 0x8db   : > { %2150 = vpow2.f32 %v1478_v13  ;;  %v1546_v38 = vsel %vm838_vm3, %v1541_v14, 0 }
 0x8dc   : > { %2012 = vmatpush3.bf16.msra.mxu0 %v1546_v38 }
 0x8de   : > { %v1591_v36 = vpop.permute.xlu1 %1590 }
 0x8df   : > { %v1612_v41 = vsel %vm718_vm2, %v2813_v12, %v1591_v36 }
 0x8e2   : > { %v1593_v39 = vpop.permute.xlu1 %1592 }
 0x8e3   : > { %v1613_v26 = vsel %vm718_vm2, %v2815_v15, %v1593_v39 }
 0x8e4   : > { %v2149_v17 = vpop.eup %2148 }
 0x8e5   : > { %v1480_v1 = vsel %vm718_vm2, %v2149_v17, 0.0 }
 0x8e6   : > { %1481 = vadd.xlane.f32.xlu0 %v1480_v1  ;;  %v1601_v42 = vpop.permute.xlu1 %1600 }
 0x8e7   : > { %v1616_v12 = vsel %vm1614_vm5, %v1613_v26, %v1601_v42 }
 0x8e8   : > { %v2151_v18 = vpop.eup %2150 }
 0x8e9   : > { %v1483_v4 = vsel %vm718_vm2, %v2151_v18, 0.0 }
 0x8ea   : > { %1484 = vadd.xlane.f32.xlu0 %v1483_v4 }
 0x900   : > { %1492 = vrot.lane.b32.xlu0 %v2777_v37, %s2408_s29 }
 0x904   : > { %1598 = vrot.lane.b32.xlu0 %v1314_v51, %s2410_s4 }
 0x96f   : > { %v1482_v19 = vpop.xlane.xlu0 %1481 }
 0x970   : > { %2152 = vrcp.f32 %v1482_v19 }
 0x973   : > { %v1485_v20 = vpop.xlane.xlu0 %1484 }
 0x974   : > { %2154 = vrcp.f32 %v1485_v20 }
 0x977   : > { %v1493_v21 = vpop.permute.xlu0 %1492 }
 0x978   : > { %v1498_v22 = vsel %vm838_vm3, %v1493_v21, 0 }
 0x979   : > { %2006 = vmatpush3.bf16.msra.mxu1 %v1498_v22 }
 0x97b   : > { %v1599_v40 = vpop.permute.xlu0 %1598 }
 0x97c   : > { %v1615_v43 = vsel %vm1614_vm5, %v1612_v41, %v1599_v40 }
 0x97d   : > { %v2153_v23 = vpop.eup %2152 }
 0x97e   : > { %v1488_v25 = vmul.f32 %v2153_v23, %v2149_v17 }
 0x980   : > { %v1490_v27 = vpack.c.bf16 %v1488_v25, %v1488_v25 }
 0x981   : > { %v2155_v28 = vpop.eup %2154 }
 0x982   : > { %2008 = vmatmul.mubr.msk.bf16.vlgmr.msra.gmra.mxu1 %vm718_vm2, %v1490_v27  ;;  %v1489_v30 = vmul.f32 %v2155_v28, %v2151_v18 }
 0x984   : > { %v1491_v31 = vpack.c.bf16 %v1489_v30, %v1489_v30 }
 0x986   : > { %2014 = vmatmul.mubr.msk.bf16.vlgmr.msra.gmra.mxu0 %vm718_vm2, %v1491_v31 }
 0xa42   : > { %v1534_v37 = vpop.f32.mrf.mxu1 }
 0xa43   : > { %1606 = vrot.lane.b32.xlu0 %v1534_v37, %s2411_s28 }
 0xa44   : > { %v2009_v32 = vpop.f32.mrf.mxu1 }
 0xa46   : > { %v1537_v16 = vpop.f32.mrf.mxu1  ;;  %v1582_v24 = vpop.f32.mrf.mxu0 }
 0xa47   : > { %1608 = vrot.lane.b32.xlu1 %v1582_v24, %s2411_s28 }
 0xa48   : > { %v2010_v33 = vpop.f32.mrf.mxu1  ;;  %v2015_v29 = vpop.f32.mrf.mxu0 }
 0xa4a   : > { %v1585_v34 = vpop.f32.mrf.mxu0 }
 0xa4c   : > { %v2016_v35 = vpop.f32.mrf.mxu0 }
 0xab5   : > { %v1607_v44 = vpop.permute.xlu0 %1606 }
 0xab6   : > { %v1618_v45 = vsel %vm1617_vm4, %v1615_v43, %v1607_v44 }
 0xab7   : > { %1620 = vst.msk [vmem:[%s471_s30] sm:$0xff] %vm511_vm1, %v1618_v45 }
 0xab9   : > { %v1609_v46 = vpop.permute.xlu1 %1608 }
 0xaba   : > { %v1619_v47 = vsel %vm1617_vm4, %v1616_v12, %v1609_v46 }
 0xabb   : > { %1621 = vst.msk [vmem:[%s471_s30 + $0x8] sm:$0xff] %vm511_vm1, %v1619_v47 }
 0xabc   : > { %2331 = shalt.err (!%p2328_p10)
}
 0xabd   : > { %s2332_s9 = scalar_lea.hbm %s2922_s3, 256  ;;  %s2336_s12 = scalar_lea.hbm %s3030_s19, 512 }
 0xabe   : > { %p2333_p11 = scmp.ne.s32.totalorder %s2922_s3, %s2332_s9  ;;  %p2337_p5 = scmp.lt.s32.totalorder %s2922_s3, %s3030_s19 }
 0xabf   : > { %p2338_p12 = scmp.lt.s32.totalorder %s2336_s12, %s2332_s9 }
 0xac0   : > { %p2334_p1 = pnand %p2333_p11, %p3031_p2 }
 0xac1   : > { %p2339_p0 = por %p2338_p12, %p2337_p5 }
 0xac2   : > { %p2335_p4 = pneg %p2334_p1 }
 0xac4   : > { %p2340_p13 = pnand %p2339_p0, %p2335_p4 }
 0xac6   : > { %2343 = shalt.err (!%p2340_p13)
}
 0xac7   : > { %s2413_s4 = smov 128  }
 0xac8   : > { %2035 = dma.vmem_to_hbm [thread:$0]  (%p3031_p2), %s2917_s18, 256, %s2922_s3, %s1623_s13, %s2413_s4, %s2413_s4, %s2409_s17  }
 0xac9 PF: > { %s3032_s28 = sld [smem:[#allocation19_spill]] }
 0xaca   : > { %s3033_s15 = sld [smem:[#allocation23_spill]] }
 0xacb   : > { %s3034_s30 = sld [smem:[#allocation20_spill]] }
 0xacf   : > { %s1651_s24 = sand.u32 1, %s3032_s28  }
 0xad0   : > { %p3035_p7 = scmp.ne.s32.totalorder %s3033_s15, 0  ;;  %s1652_s27 = scalar_lea.sflag [#allocation4], %s1651_s24 }
 0xad1   : > { %p3036_p3 = scmp.ge.s32.totalorder %s3034_s30, 2 }
 0xad3   : > { %p2058_p6 = pnand %p3036_p3, %p3035_p7 }
 0xad5   : > { %p2059_p8 = pneg %p2058_p6 }
 0xad7   : > { %2377 = dma.done.wait (%p2059_p8), %s1652_s27, 256  }
 0xad8   : > { %2379 = vsyncadd (%p2059_p8), %s1652_s27, 4294967040  ;;  %s3037_s12 = sld [smem:[#allocation21_spill]]  ;;  %s3039_s30 = smov %s2386_s10 }
 0xad9   : > { %s3038_s21 = sld [smem:[#allocation22_spill]]  ;;  %s3040_s10 = smov %s2390_s11 }
 0xade   : > { %p27_p9 = scmp.ge.s32.totalorder %s3037_s12, 4  }
 0xadf   : > { %s3041_s11 = smov %s3038_s21 }
 0xae0   :  { %29 = sbr.rel (!%p27_p9) target bundleno = 15 (0xf), region = 137 }
 0xae5   :  { %1657 = vsyncpa [#allocation3], 1 }
 0xae6   :  { %1659 = vsyncpa [#allocation3 + $0x1], 1 }
 0xae7   :  { %1660 = vsyncpa [#allocation6], 1 }
 0xae8   :  { %1662 = vsyncpa [#allocation6 + $0x1], 1 }
 0xae9   :  { %1663 = vsyncpa [#allocation9], 1 }
 0xaea   :  { %1664 = vsyncpa [#allocation12], 1 }
 0xaeb   :  { %1665 = vsyncpa [#allocation4], 1 }
 0xaec   :  { %1667 = vsyncpa [#allocation4 + $0x1], 1 }

// kernel: tpu_custom_call.1
= control target key start
LH: loop header
LB: loop body
LE: loop exit
PB: predicated region body
PF: predicated region fallthrough
CT: control target
= control target key end

     0   :  { %s2968_s0 = inlined_call_operand.hbm [shape: bf16[4,8,32], index: 0, kind: input, shape index: {}]   ;;  %s2969_s1 = inlined_call_operand.hbm [shape: bf16[4,8,32], index: 1, kind: input, shape index: {}]   ;;  %s2970_s2 = inlined_call_operand.hbm [shape: bf16[4,8,32], index: 2, kind: input, shape index: {}]   ;;  %s2971_s3 = inlined_call_operand.hbm [shape: bf16[32,32], index: 3, kind: input, shape index: {}]   ;;  %s2972_s4 = inlined_call_operand.hbm [shape: bf16[32,32], index: 4, kind: input, shape index: {}]   ;;  %s2973_s5 = inlined_call_operand.hbm [shape: bf16[32,32], index: 5, kind: input, shape index: {}]   ;;  %s2974_s6 = inlined_call_operand.vmem [shape: f32[1,32], index: 6, kind: input, shape index: {}]   ;;  %s2975_s7 = inlined_call_operand.vmem [shape: f32[1,32], index: 7, kind: input, shape index: {}]   ;;  %s2976_s8 = inlined_call_operand.vmem [shape: f32[1,32], index: 8, kind: input, shape index: {}]   ;;  %s2977_s9 = inlined_call_operand.hbm [shape: f32[4,8,32], index: 9, kind: output, shape index: {}]  }
   0x1   :  { %2996 = sst [smem:[#allocation24_spill]] %s2969_s1 }
   0x2   :  { %2997 = sst [smem:[#allocation25_spill]] %s2971_s3 }
   0x3   :  { %2998 = sst [smem:[#allocation26_spill]] %s2972_s4 }
   0x4   :  { %2999 = sst [smem:[#allocation27_spill]] %s2973_s5 }
   0x5   :  { %3000 = sst [smem:[#allocation28_spill]] %s2977_s9 }
   0x6   :  { %14 = vsyncpa [#allocation3], 0 }
   0x7   :  { %16 = vsyncpa [#allocation3 + $0x1], 0 }
   0x8   :  { %17 = vsyncpa [#allocation6], 0 }
   0x9   :  { %19 = vsyncpa [#allocation6 + $0x1], 0 }
   0xa   :  { %20 = vsyncpa [#allocation9], 0 }
   0xb   :  { %21 = vsyncpa [#allocation12], 0 }
   0xc   :  { %22 = vsyncpa [#allocation4], 0 }
   0xd   :  { %24 = vsyncpa [#allocation4 + $0x1], 0  ;;  %s2464_s30 = smov 0   ;;  %s2466_s10 = smov 0  }
   0xe   :  { %s2468_s11 = smov 0   ;;  %s2470_s12 = smov 0  }
   0xf LB: > { %3001 = sst [smem:[#allocation19_spill]] %s2382_s30  ;;  %s2485_s13 = sadd.s32 4294967295, %s2394_s12   ;;  %s2394_s12 = sphi %s2470_s12, %s3037_s12   ;;  %s2390_s11 = sphi %s2468_s11, %s3041_s11   ;;  %s2386_s10 = sphi %s2466_s10, %s3040_s10   ;;  %s2382_s30 = sphi %s2464_s30, %s3039_s30  }
  0x10   : > { %3002 = sst [smem:[#allocation20_spill]] %s2394_s12  ;;  %s1781_s14 = sadd.s32 4294967294, %s2394_s12  }
  0x11   : > { %s2489_s15 = sadd.s32 1, %s2394_s12   ;;  %s37_s16 = sadd.s32 1, %s2390_s11 }
  0x12   : > { %3003 = sst [smem:[#allocation21_spill]] %s2489_s15  ;;  %s34_s17 = ssub.s32 %s2394_s12, %s2489_s15 }
  0x13   : > { %p44_p0 = scmp.ne.s32.totalorder %s2390_s11, %s2386_s10  ;;  %p35_p1 = scmp.eq.s32.totalorder %s34_s17, 0 }
  0x14   : > { %p45_p2 = scmp.eq.s32.totalorder %s2394_s12, 0  ;;  %p50_p3 = scmp.ne.s32.totalorder %s2386_s10, %s2382_s30 }
  0x15   : > { %p2978_p4 = scmp.eq.s32.totalorder %s2485_s13, 0  ;;  %p252_p7 = scmp.eq.s32.totalorder %s2485_s13, 1 }
  0x16   : > { %s2501_s18 = scalar_select %p35_p1, %s2390_s11, %s37_s16  }
  0x17   : > { %p2503_p5 = por %p45_p2, %p44_p0  ;;  %p2509_p6 = por %p2978_p4, %p50_p3 }
  0x18   : > { %3004 = sst [smem:[#allocation22_spill]] %s2501_s18  ;;  %p258_p8 = scmp.eq.s32.totalorder %s1781_s14, 1 }
  0x19   : > { %s3006_s20 = scalar_select %p2509_p6, 1, 0 }
  0x1a   : > { %p1782_p9 = scmp.ge.s32.totalorder %s2394_s12, 1  ;;  %p265_p10 = scmp.lt.s32.totalorder %s2394_s12, 3 }
  0x1b   : > { %p2516_p11 = por %p252_p7, %p44_p0  ;;  %p2520_p12 = por %p258_p8, %p50_p3 }
  0x1c   : > { %p2524_p13 = pnand %p1782_p9, %p265_p10  ;;  %s2396_s24 = smov [#allocation8]  }
  0x1d   : > { %s3007_s21 = scalar_select %p2516_p11, 1, 0 }
  0x1e   : > { %s3008_s22 = scalar_select %p2520_p12, 1, 0 }
  0x1f   : > { %s3010_s23 = scalar_select %p2524_p13, 1, 0 }
  0x20   : > { %3009 = sst [smem:[#allocation23_spill]] %s3008_s22  ;;  %p2037_p1 = pneg %p2524_p13 }
  0x21   : > { %s277_s25 = sshll.u32 %s2396_s24, 4  ;;  %p2064_p3 = scmp.lt.s32.totalorder %s2394_s12, 2  ;;  %s278_s25 = int_to_ptr.vmem [resolvable:$true] %s277_s25 }
  0x22   : > { %p2532_p2 = pnand %p2037_p1, %p2978_p4  ;;  %s2980_s27 = sand.u32 1, %s2390_s11  }
  0x23   : > { %s2541_s28 = sshll.u32 %s2980_s27, 3  ;;  %s2167_s29 = scalar_lea.vmem %s278_s25, 256 }
  0x24   : > { %s3011_s26 = scalar_select %p2532_p2, 1, 0 }
  0x25   : > { %p2990_p7 = pneg %p2532_p2  ;;  %p2168_p8 = scmp.ne.s32.totalorder %s278_s25, %s2167_s29 }
  0x26   : > { %p2175_p1 = scmp.lt.s32.totalorder %s278_s25, %s278_s25  ;;  %p2176_p4 = scmp.lt.s32.totalorder %s2167_s29, %s2167_s29 }
  0x27   : > { %p2170_p9 = pnand %p2168_p8, %p2990_p7 }
  0x28   : > { %p2177_p12 = por %p2176_p4, %p2175_p1 }
  0x29   : > { %p2171_p10 = pneg %p2170_p9 }
  0x2b   : > { %p2178_p11 = pnand %p2177_p12, %p2171_p10 }
  0x2d   : > { %2181 = shalt.err (!%p2178_p11)
}
  0x2e   : > { %s2985_s14 = smov 64   ;;  %s2987_s16 = smov 4  }
  0x2f   : > { %s3012_s3 = sld [smem:[#allocation25_spill]]  ;;  %s2557_s29 = sshll.u32 %s2394_s12, 7 }
  0x30   : > { %p2563_p4 = pnand %p2064_p3, %p2503_p5  ;;  %s347_s18 = sand.u32 1, %s2394_s12  }
  0x31   : > { %s3014_s1 = sld [smem:[#allocation24_spill]]  ;;  %s2577_s19 = scalar_lea.sflag [#allocation6], %s347_s18 }
  0x32   : > { %p2583_p11 = pneg %p2563_p4 }
  0x35   : > { %2040 = dma.hbm_to_vmem [thread:$0]  (!%p2532_p2), %s3012_s3, 256, %s278_s25, [#allocation9], %s2985_s14, %s2985_s14, %s2987_s16  }
  0x36   : > { %s351_s25 = scalar_lea.vmem [#allocation5], %s2541_s28 }
  0x37   : > { %s2572_s30 = scalar_lea.hbm %s3014_s1, %s2557_s29  ;;  %s358_s17 = sshll.u32 %s351_s25, 4  ;;  %s2575_s17 = int_to_ptr.vmem [resolvable:$true] %s358_s17 }
  0x38   : > { %s2182_s24 = scalar_lea.hbm %s2572_s30, 128  ;;  %s2187_s16 = scalar_lea.hbm %s3014_s1, 256 }
  0x39   : > { %p2183_p5 = scmp.ne.s32.totalorder %s2572_s30, %s2182_s24  ;;  %p2188_p8 = scmp.lt.s32.totalorder %s2572_s30, %s3014_s1 }
  0x3a   : > { %p2189_p9 = scmp.lt.s32.totalorder %s2187_s16, %s2182_s24 }
  0x3b   : > { %p2185_p12 = pnand %p2583_p11, %p2183_p5 }
  0x3c   : > { %p2190_p10 = por %p2189_p9, %p2188_p8 }
  0x3d   : > { %p2186_p3 = pneg %p2185_p12 }
  0x3f   : > { %p2191_p1 = pnand %p2190_p10, %p2186_p3 }
  0x41   : > { %2194 = shalt.err (!%p2191_p1)
}
  0x42   : > { %s2195_s18 = scalar_lea.vmem %s2575_s17, 128  ;;  %s2399_s12 = smov [#allocation5]  }
  0x43   : > { %p2196_p0 = scmp.ne.s32.totalorder %s2575_s17, %s2195_s18  ;;  %s2200_s15 = sshll.u32 %s2399_s12, 4  ;;  %s2201_s15 = int_to_ptr.vmem [resolvable:$false] %s2200_s15 }
  0x44   : > { %s2202_s22 = scalar_lea.vmem %s2201_s15, 256  ;;  %p2203_p7 = scmp.lt.s32.totalorder %s2575_s17, %s2201_s15 }
  0x45   : > { %p2198_p5 = pnand %p2196_p0, %p2583_p11  ;;  %p2204_p6 = scmp.lt.s32.totalorder %s2202_s22, %s2195_s18 }
  0x47   : > { %p2199_p12 = pneg %p2198_p5  ;;  %p2205_p13 = por %p2204_p6, %p2203_p7 }
  0x49   : > { %p2206_p2 = pnand %p2205_p13, %p2199_p12 }
  0x4b   : > { %2209 = shalt.err (!%p2206_p2)
}
  0x4c   : > { %s3016_s3 = smov 4   ;;  %s3017_s16 = smov 64  }
  0x4d   : > { %2053 = dma.hbm_to_vmem [thread:$0]  (!%p2563_p4), %s2572_s30, 128, %s2575_s17, %s2577_s19, %s3017_s16, %s3017_s16, %s3016_s3  }
  0x4e   : > { %s2400_s24 = smov [#allocation10]   ;;  %s2401_s12 = smov [#allocation11]  }
  0x4f   : > { %s290_s25 = sshll.u32 %s2400_s24, 4  ;;  %s303_s1 = sshll.u32 %s2401_s12, 4  ;;  %s291_s25 = int_to_ptr.vmem [resolvable:$true] %s290_s25  ;;  %s304_s1 = int_to_ptr.vmem [resolvable:$true] %s303_s1 }
  0x50   : > { %s2221_s15 = scalar_lea.vmem %s291_s25, 256  ;;  %p3018_p6 = scmp.ne.s32.totalorder %s3011_s26, 0 }
  0x51   : > { %p2222_p0 = scmp.ne.s32.totalorder %s291_s25, %s2221_s15  ;;  %p2229_p3 = scmp.lt.s32.totalorder %s291_s25, %s291_s25 }
  0x52   : > { %p3019_p13 = pneg %p3018_p6  ;;  %p2230_p8 = scmp.lt.s32.totalorder %s2221_s15, %s2221_s15 }
  0x54   : > { %p2224_p2 = pnand %p2222_p0, %p3019_p13  ;;  %p2231_p9 = por %p2230_p8, %p2229_p3 }
  0x56   : > { %p2225_p7 = pneg %p2224_p2 }
  0x58   : > { %p2232_p10 = pnand %p2231_p9, %p2225_p7 }
  0x5a   : > { %2235 = shalt.err (!%p2232_p10)
}
  0x5b   : > { %s3020_s4 = sld [smem:[#allocation26_spill]]  ;;  %s2247_s18 = scalar_lea.vmem %s304_s1, 256 }
  0x5c   : > { %p2248_p1 = scmp.ne.s32.totalorder %s304_s1, %s2247_s18  ;;  %p3021_p5 = pmov %p3019_p13 }
  0x5d   : > { %p2255_p13 = scmp.lt.s32.totalorder %s304_s1, %s304_s1  ;;  %p2256_p2 = scmp.lt.s32.totalorder %s2247_s18, %s2247_s18 }
  0x5e   : > { %p2250_p12 = pnand %p2248_p1, %p3021_p5 }
  0x5f   : > { %p2257_p7 = por %p2256_p2, %p2255_p13 }
  0x60   : > { %p2251_p0 = pneg %p2250_p12 }
  0x61   : > { %2043 = dma.hbm_to_vmem [thread:$0]  (!%p3018_p6), %s3020_s4, 256, %s291_s25, [#allocation9], %s3017_s16, %s3017_s16, %s3016_s3  }
  0x62   : > { %p2258_p3 = pnand %p2257_p7, %p2251_p0 }
  0x64   : > { %2261 = shalt.err (!%p2258_p3)
}
  0x65   : > { %s3022_s5 = sld [smem:[#allocation27_spill]]  ;;  %s2635_s15 = scalar_lea.hbm %s2968_s0, %s2557_s29 }
  0x66   : > { %s330_s26 = scalar_lea.vmem [#allocation2], %s2541_s28  ;;  %s2644_s22 = scalar_lea.hbm %s2970_s2, %s2557_s29 }
  0x67   : > { %s337_s30 = sshll.u32 %s330_s26, 4  ;;  %s3023_s24 = sand.u32 1, %s2390_s11   ;;  %s2638_s30 = int_to_ptr.vmem [resolvable:$true] %s337_s30 }
  0x68   : > { %s327_s4 = scalar_lea.sflag [#allocation3], %s3023_s24  ;;  %p2268_p10 = scmp.lt.s32.totalorder %s2635_s15, %s2968_s0 }
  0x6b   : > { %2046 = dma.hbm_to_vmem [thread:$0]  (!%p3018_p6), %s3022_s5, 256, %s304_s1, [#allocation12], %s3017_s16, %s3017_s16, %s3016_s3  }
  0x6c   : > { %s2262_s1 = scalar_lea.hbm %s2635_s15, 128  ;;  %s2267_s5 = scalar_lea.hbm %s2968_s0, 256 }
  0x6d   : > { %p2263_p6 = scmp.ne.s32.totalorder %s2635_s15, %s2262_s1  ;;  %p2269_p1 = scmp.lt.s32.totalorder %s2267_s5, %s2262_s1 }
  0x6f   : > { %p2265_p8 = pnand %p2263_p6, %p2583_p11  ;;  %p2270_p5 = por %p2269_p1, %p2268_p10 }
  0x71   : > { %p2266_p9 = pneg %p2265_p8 }
  0x73   : > { %p2271_p12 = pnand %p2270_p5, %p2266_p9 }
  0x75   : > { %2274 = shalt.err (!%p2271_p12)
}
  0x76   : > { %s2275_s29 = scalar_lea.vmem %s2638_s30, 128  ;;  %s2402_s17 = smov [#allocation2]  }
  0x77   : > { %p2276_p0 = scmp.ne.s32.totalorder %s2638_s30, %s2275_s29  ;;  %s2280_s18 = sshll.u32 %s2402_s17, 4  ;;  %s2281_s18 = int_to_ptr.vmem [resolvable:$false] %s2280_s18 }
  0x78   : > { %s2282_s24 = scalar_lea.vmem %s2281_s18, 256  ;;  %p2283_p7 = scmp.lt.s32.totalorder %s2638_s30, %s2281_s18 }
  0x79   : > { %p2278_p13 = pnand %p2276_p0, %p2583_p11  ;;  %p2284_p3 = scmp.lt.s32.totalorder %s2282_s24, %s2275_s29 }
  0x7b   : > { %p2279_p2 = pneg %p2278_p13  ;;  %p2285_p6 = por %p2284_p3, %p2283_p7 }
  0x7d   : > { %p2286_p8 = pnand %p2285_p6, %p2279_p2 }
  0x7f   : > { %2289 = shalt.err (!%p2286_p8)
}
  0x80   : > { %2050 = dma.hbm_to_vmem [thread:$0]  (!%p2563_p4), %s2635_s15, 128, %s2638_s30, %s327_s4, %s3017_s16, %s3017_s16, %s3016_s3  }
  0x81   : > { %s372_s5 = scalar_lea.vmem [#allocation7], %s2541_s28  ;;  %s2290_s1 = scalar_lea.hbm %s2644_s22, 128 }
  0x82   : > { %s379_s9 = sshll.u32 %s372_s5, 4  ;;  %p2291_p9 = scmp.ne.s32.totalorder %s2644_s22, %s2290_s1  ;;  %s380_s9 = int_to_ptr.vmem [resolvable:$true] %s379_s9 }
  0x83   : > { %s2295_s26 = scalar_lea.hbm %s2970_s2, 256  ;;  %p2296_p5 = scmp.lt.s32.totalorder %s2644_s22, %s2970_s2 }
  0x84   : > { %p2293_p10 = pnand %p2291_p9, %p2583_p11  ;;  %p2297_p12 = scmp.lt.s32.totalorder %s2295_s26, %s2290_s1 }
  0x86   : > { %p2294_p1 = pneg %p2293_p10  ;;  %p2298_p0 = por %p2297_p12, %p2296_p5 }
  0x88   : > { %p2299_p13 = pnand %p2298_p0, %p2294_p1 }
  0x8a   : > { %2302 = shalt.err (!%p2299_p13)
}
  0x8b   : > { %s2303_s4 = scalar_lea.vmem %s380_s9, 128  ;;  %s2403_s28 = smov [#allocation7]  }
  0x8c   : > { %p2304_p2 = scmp.ne.s32.totalorder %s380_s9, %s2303_s4  ;;  %s2308_s15 = sshll.u32 %s2403_s28, 4  ;;  %s2309_s15 = int_to_ptr.vmem [resolvable:$false] %s2308_s15 }
  0x8d   : > { %s2310_s30 = scalar_lea.vmem %s2309_s15, 256  ;;  %p2311_p6 = scmp.lt.s32.totalorder %s380_s9, %s2309_s15 }
  0x8e   : > { %p2306_p7 = pnand %p2304_p2, %p2583_p11  ;;  %p2312_p8 = scmp.lt.s32.totalorder %s2310_s30, %s2303_s4 }
  0x90   : > { %p2307_p3 = pneg %p2306_p7  ;;  %p2313_p9 = por %p2312_p8, %p2311_p6 }
  0x92   : > { %p2314_p10 = pnand %p2313_p9, %p2307_p3 }
  0x94   : > { %2317 = shalt.err (!%p2314_p10)
}
  0x95   : > { %2056 = dma.hbm_to_vmem [thread:$0]  (!%p2563_p4), %s2644_s22, 128, %s380_s9, %s2577_s19, %s3017_s16, %s3017_s16, %s3016_s3  }
  0x96   : > { %p3024_p11 = scmp.ne.s32.totalorder %s3010_s23, 0 }
  0x97   : > { %s2695_s14 = sand.u32 (!%p3024_p11), 1, %s2386_s10   ;;  %p3025_p1 = scmp.ne.s32.totalorder (!%p3024_p11), %s3006_s20, 0 }
  0x98   : > { %391 = sbr.rel (%p3024_p11) target bundleno = 2761 (0xac9), region = 56  ;;  %s2698_s18 = sshll.u32 (!%p3024_p11), %s2695_s14, 3 }
  0x99   : > { %s394_s24 = scalar_lea.sflag (!%p3024_p11), [#allocation3], %s2695_s14  ;;  %s397_s27 = scalar_lea.vmem (!%p3024_p11), [#allocation2], %s2698_s18 }
  0x9d   : > { %2361 = dma.done.wait (%p3025_p1), %s394_s24, 128  }
  0x9e   : > { %2363 = vsyncadd (%p3025_p1), %s394_s24, 4294967168  ;;  %s402_s23 = sand.u32 1, %s2485_s13   ;;  %s406_s3 = scalar_lea.vmem [#allocation5], %s2698_s18 }
  0x9f   : > { %s403_s19 = scalar_lea.sflag [#allocation6], %s402_s23 }
  0xa0   : > { %2365 = dma.done.wait (%p3025_p1), %s403_s19, 256  }
  0xa1   : > { %2367 = vsyncadd (%p3025_p1), %s403_s19, 4294967040  ;;  %s415_s16 = scalar_lea.vmem [#allocation7], %s2698_s18  ;;  %p3026_p4 = scmp.eq.s32.totalorder %s2485_s13, 0 }
  0xa3   : > { %2369 = dma.done.wait (%p3026_p4), [#allocation9], 512   ;;  %p3027_p5 = pmov %p3026_p4 }
  0xa4   : > { %p3028_p12 = pmov %p3026_p4 }
  0xa5   : > { %2371 = vsyncadd (%p3027_p5), [#allocation9], 4294966784 }
  0xa6   : > { %2373 = dma.done.wait (%p3028_p12), [#allocation12], 256   ;;  %p3029_p0 = pmov %p3026_p4 }
  0xa7   : > { %v2404_v0 = vmov 0.0   ;;  %vm2405_vm0 = vmmov 0   ;;  %v2115_v1 = vld [vmem:[#allocation10 + $0x8] sm:$0xff]   ;;  %v2116_v2 = vld [vmem:[#allocation8 + $0x8] sm:$0xff]   ;;  %v2117_v3 = vld [vmem:[#allocation10] sm:$0xff]   ;;  %vm511_vm1 = vcmask 261120  }
  0xa8   : > { %2375 = vsyncadd (%p3029_p0), [#allocation12], 4294967040  ;;  %1905 = vmatprep.subr.bf16.mxu1 %v2404_v0  ;;  %1897 = vmatprep.subr.bf16.mxu0 %v2404_v0  ;;  %v2118_v4 = vld [vmem:[#allocation8] sm:$0xff]   ;;  %v2120_v6 = vld [vmem:[%s397_s27] sm:$0xff]   ;;  %vm718_vm2 = vcmask 64512   ;;  %s2406_s1 = smov 120  }
  0xa9   : > { %1909 = vmatprep.mubr.msk.bf16.mxu1 %vm2405_vm0, %v2404_v0  ;;  %1901 = vmatprep.mubr.msk.bf16.mxu0 %vm2405_vm0, %v2404_v0  ;;  %v2119_v5 = vld [vmem:[%s406_s3] sm:$0xff]   ;;  %v2123_v9 = vld [vmem:[%s415_s16] sm:$0xff]   ;;  %vm838_vm3 = vcmask 1043456   ;;  %s2407_s26 = smov 112   ;;  %s2408_s29 = smov 104   ;;  %vm1617_vm4 = vcmask 195584  }
  0xaa   : > { %1906 = vmatpush3.bf16.msra.mxu1 %v2115_v1  ;;  %1898 = vmatpush3.bf16.msra.mxu0 %v2116_v2  ;;  %v2121_v7 = vld [vmem:[#allocation11 + $0x8] sm:$0xff]   ;;  %v2122_v8 = vld [vmem:[#allocation11] sm:$0xff]   ;;  %v1809_v10 = vld [vmem:[%s2975_s7] ss:$0 sm:$0xff]  ;;  %s2409_s17 = smov 8   ;;  %s2410_s4 = smov 16  }
  0xab   : > { %1907 = vmatprep.subr.bf16.mxu1 %v2404_v0  ;;  %1899 = vmatprep.subr.bf16.mxu0 %v2404_v0  ;;  %v1804_v15 = vld [vmem:[%s2974_s6] ss:$0 sm:$0xff]  ;;  %s2411_s28 = smov 24   ;;  %s1803_s15 = sshll.u32 %s2695_s14, 4  ;;  %vm1614_vm5 = vcmask 130048  }
  0xac   : > { %v1814_v30 = vld [vmem:[%s2976_s8] ss:$0 sm:$0xff]  ;;  %s471_s30 = scalar_lea.vmem [#allocation13], %s1803_s15  ;;  %s1855_s24 = sshll.u32 %s2485_s13, 8 }
  0xad   : > { %s1636_s18 = sshll.u32 %s471_s30, 4  ;;  %s3030_s19 = sld [smem:[#allocation28_spill]]  ;;  %s2917_s18 = int_to_ptr.vmem [resolvable:$true] %s1636_s18 }
  0xae   : > { %1908 = vmatpush3.bf16.msra.mxu1 %v2117_v3  ;;  %1900 = vmatpush3.bf16.msra.mxu0 %v2118_v4  ;;  %s1623_s13 = scalar_lea.sflag [#allocation4], %s2695_s14  ;;  %s2318_s16 = scalar_lea.vmem %s2917_s18, 256 }
  0xaf   : > { %1921 = vmatprep.subr.bf16.mxu1 %v2404_v0  ;;  %1913 = vmatprep.subr.bf16.mxu0 %v2404_v0  ;;  %p2319_p13 = scmp.ne.s32.totalorder %s2917_s18, %s2318_s16  ;;  %p3031_p2 = scmp.ne.s32.totalorder %s3007_s21, 0 }
  0xb0   : > { %s2412_s20 = smov [#allocation13]  }
  0xb1   : > { %1910 = vmatmul.mubr.msk.bf16.vlgmr.msra.gmra.mxu1 %vm511_vm1, %v2119_v5  ;;  %1902 = vmatmul.mubr.msk.bf16.vlgmr.msra.gmra.mxu0 %vm511_vm1, %v2120_v6  ;;  %p2320_p7 = pnand %p2319_p13, %p3031_p2  ;;  %s2322_s22 = sshll.u32 %s2412_s20, 4  ;;  %s2323_s22 = int_to_ptr.vmem [resolvable:$false] %s2322_s22 }
  0xb2   : > { %1923 = vmatprep.mubr.msk.bf16.mxu1 %vm2405_vm0, %v2404_v0  ;;  %1914 = vmatpush3.bf16.msra.mxu0 %v2121_v7  ;;  %s2324_s5 = scalar_lea.vmem %s2323_s22, 512  ;;  %p2325_p6 = scmp.lt.s32.totalorder %s2917_s18, %s2323_s22 }
  0xb3   : > { %1917 = vmatprep.mubr.msk.bf16.mxu0 %vm2405_vm0, %v2404_v0  ;;  %1915 = vmatprep.subr.bf16.mxu0 %v2404_v0  ;;  %s2922_s3 = scalar_lea.hbm %s3030_s19, %s1855_s24  ;;  %p2321_p3 = pneg %p2320_p7 }
  0xb4   : > { %p2326_p8 = scmp.lt.s32.totalorder %s2324_s5, %s2318_s16 }
  0xb6   : > { %1916 = vmatpush3.bf16.msra.mxu0 %v2122_v8  ;;  %p2327_p9 = por %p2326_p8, %p2325_p6 }
  0xb7   : > { %1927 = vmatprep.subr.bf16.mxu0 %v2404_v0 }
  0xb8   : > { %p2328_p10 = pnand %p2327_p9, %p2321_p3 }
  0xb9   : > { %1918 = vmatmul.mubr.msk.bf16.vlgmr.msra.gmra.mxu0 %vm511_vm1, %v2123_v9 }
  0xba   : > { %1929 = vmatprep.mubr.msk.bf16.mxu0 %vm2405_vm0, %v2404_v0 }
 0x171   : > { %v622_v11 = vpop.f32.mrf.mxu1  ;;  %v549_v13 = vpop.f32.mrf.mxu0 }
 0x172   : > { %v623_v12 = vadd.f32 %v1809_v10, %v622_v11  ;;  %v550_v19 = vadd.f32 %v1804_v15, %v549_v13 }
 0x173   : > { %v1911_v14 = vpop.f32.mrf.mxu1  ;;  %v1903_v17 = vpop.f32.mrf.mxu0 }
 0x174   : > { %v2750_v16 = vpack.c.bf16 %v623_v12, %v623_v12  ;;  %v2757_v26 = vpack.c.bf16 %v550_v19, %v550_v19 }
 0x175   : > { %v625_v18 = vpop.f32.mrf.mxu1  ;;  %v552_v22 = vpop.f32.mrf.mxu0 }
 0x176   : > { %v626_v20 = vadd.f32 %v1809_v10, %v625_v18  ;;  %v723_v21 = vsel %vm718_vm2, %v2750_v16, 0  ;;  %v553_v28 = vadd.f32 %v1804_v15, %v552_v22 }
 0x177   : > { %v1912_v23 = vpop.f32.mrf.mxu1  ;;  %1922 = vmatpush3.bf16.xpose.msra.mxu1 %v723_v21  ;;  %v1904_v25 = vpop.f32.mrf.mxu0 }
 0x178   : > { %v2754_v24 = vpack.c.bf16 %v626_v20, %v626_v20  ;;  %1933 = vmatprep.subr.bf16.mxu1 %v2404_v0  ;;  %v2768_v29 = vpack.c.bf16 %v553_v28, %v553_v28 }
 0x179   : > { %v695_v31 = vpop.f32.mrf.mxu0 }
 0x17a   : > { %980 = vrot.lane.b32.xlu1 %v2754_v24, %s2406_s1  ;;  %v769_v27 = vsel %vm718_vm2, %v2754_v24, 0  ;;  %v696_v33 = vadd.f32 %v1814_v30, %v695_v31 }
 0x17b   : > { %1928 = vmatpush3.bf16.xpose.msra.mxu0 %v769_v27  ;;  %v1919_v32 = vpop.f32.mrf.mxu0 }
 0x17c   : > { %1939 = vmatprep.subr.bf16.mxu0 %v2404_v0  ;;  %v2777_v37 = vpack.c.bf16 %v696_v33, %v696_v33 }
 0x17d   : > { %v698_v34 = vpop.f32.mrf.mxu0 }
 0x17e   : > { %1924 = vmatmul.mubr.msk.bf16.vlgmr.msra.gmra.mxu1 %vm718_vm2, %v2757_v26  ;;  %v699_v35 = vadd.f32 %v1814_v30, %v698_v34  ;;  %v840_v39 = vsel %vm838_vm3, %v2777_v37, 0 }
 0x17f   : > { %1935 = vmatprep.mubr.msk.bf16.mxu1 %vm2405_vm0, %v2404_v0  ;;  %v1920_v36 = vpop.f32.mrf.mxu0  ;;  %1934 = vmatpush3.bf16.msra.mxu1 %v840_v39 }
 0x180   : > { %v2779_v38 = vpack.c.bf16 %v699_v35, %v699_v35  ;;  %1945 = vmatprep.subr.bf16.mxu1 %v2404_v0 }
 0x182   : > { %1930 = vmatmul.mubr.msk.bf16.vlgmr.msra.gmra.mxu0 %vm718_vm2, %v2768_v29  ;;  %v886_v40 = vsel %vm838_vm3, %v2779_v38, 0 }
 0x183   : > { %1941 = vmatprep.mubr.msk.bf16.mxu0 %vm2405_vm0, %v2404_v0  ;;  %1940 = vmatpush3.bf16.msra.mxu0 %v886_v40 }
 0x184   : > { %1951 = vmatprep.subr.bf16.mxu0 %v2404_v0 }
 0x1ec   : > { %v981_v61 = vpop.permute.xlu1 %980 }
 0x1ed   : > { %v986_v9 = vsel %vm718_vm2, %v981_v61, 0 }
 0x23e   : > { %v759_v41 = vpop.f32.mrf.mxu1 }
 0x23f   : > { %v811_v42 = vsel %vm718_vm2, %v759_v41, -inf }
 0x240   : > { %812 = vmax.xlane.f32.xlu0 %v811_v42  ;;  %v1925_v43 = vpop.f32.mrf.mxu1 }
 0x242   : > { %v762_v44 = vpop.f32.mrf.mxu1  ;;  %v805_v45 = vpop.f32.mrf.mxu0 }
 0x243   : > { %v814_v46 = vsel %vm718_vm2, %v805_v45, -inf }
 0x244   : > { %v1926_v47 = vpop.f32.mrf.mxu1  ;;  %815 = vmax.xlane.f32.xlu0 %v814_v46  ;;  %v1931_v48 = vpop.f32.mrf.mxu0 }
 0x246   : > { %v808_v49 = vpop.f32.mrf.mxu0 }
 0x248   : > { %v1932_v50 = vpop.f32.mrf.mxu0 }
 0x25a   : > { %930 = vrot.lane.b32.xlu0 %v2750_v16, %s2406_s1 }
 0x2c9   : > { %v813_v51 = vpop.xlane.xlu0 %812 }
 0x2ca   : > { %v817_v52 = vsub.f32 %v759_v41, %v813_v51 }
 0x2cc   : > { %v819_v53 = vmul.f32 1.442695, %v817_v52 }
 0x2cd   : > { %v816_v54 = vpop.xlane.xlu0 %815 }
 0x2ce   : > { %2124 = vpow2.f32 %v819_v53  ;;  %v818_v55 = vsub.f32 %v805_v45, %v816_v54 }
 0x2d0   : > { %v821_v56 = vmul.f32 1.442695, %v818_v55 }
 0x2d1   : > { %v931_v3 = vpop.permute.xlu0 %930 }
 0x2d2   : > { %2126 = vpow2.f32 %v821_v56  ;;  %v936_v6 = vsel %vm718_vm2, %v931_v3, 0 }
 0x2db   : > { %v2125_v57 = vpop.eup %2124 }
 0x2dc   : > { %v823_v58 = vsel %vm718_vm2, %v2125_v57, 0.0 }
 0x2dd   : > { %824 = vadd.xlane.f32.xlu1 %v823_v58 }
 0x2df   : > { %v2127_v59 = vpop.eup %2126 }
 0x2e0   : > { %v826_v60 = vsel %vm718_vm2, %v2127_v59, 0.0 }
 0x2e1   : > { %827 = vadd.xlane.f32.xlu1 %v826_v60 }
 0x2f2   : > { %928 = vrot.lane.b32.xlu1 %v2757_v26, %s2406_s1 }
 0x2f6   : > { %978 = vrot.lane.b32.xlu1 %v2768_v29, %s2406_s1 }
 0x366   : > { %v825_v62 = vpop.xlane.xlu1 %824 }
 0x367   : > { %2128 = vrcp.f32 %v825_v62 }
 0x36a   : > { %v828_v63 = vpop.xlane.xlu1 %827 }
 0x36b   : > { %2130 = vrcp.f32 %v828_v63 }
 0x36e   : > { %v929_v10 = vpop.permute.xlu1 %928 }
 0x372   : > { %v979_v11 = vpop.permute.xlu1 %978 }
 0x374   : > { %v2129_v1 = vpop.eup %2128 }
 0x375   : > { %v831_v2 = vmul.f32 %v2129_v1, %v2125_v57 }
 0x377   : > { %v833_v4 = vpack.c.bf16 %v831_v2, %v831_v2 }
 0x378   : > { %v2131_v5 = vpop.eup %2130 }
 0x379   : > { %1936 = vmatmul.mubr.msk.bf16.vlgmr.msra.gmra.mxu1 %vm718_vm2, %v833_v4  ;;  %v832_v7 = vmul.f32 %v2131_v5, %v2127_v59 }
 0x37a   : > { %1946 = vmatpush3.bf16.xpose.msra.mxu1 %v936_v6  ;;  %1947 = vmatprep.mubr.msk.bf16.mxu1 %vm2405_vm0, %v2404_v0 }
 0x37b   : > { %v834_v8 = vpack.c.bf16 %v832_v7, %v832_v7  ;;  %1957 = vmatprep.subr.bf16.mxu1 %v2404_v0 }
 0x37d   : > { %1942 = vmatmul.mubr.msk.bf16.vlgmr.msra.gmra.mxu0 %vm718_vm2, %v834_v8 }
 0x37e   : > { %1952 = vmatpush3.bf16.xpose.msra.mxu0 %v986_v9  ;;  %1953 = vmatprep.mubr.msk.bf16.mxu0 %vm2405_vm0, %v2404_v0 }
 0x37f   : > { %1963 = vmatprep.subr.bf16.mxu0 %v2404_v0 }
 0x381   : > { %1948 = vmatmul.mubr.msk.bf16.vlgmr.msra.gmra.mxu1 %vm718_vm2, %v929_v10 }
 0x382   : > { %1959 = vmatprep.mubr.msk.bf16.mxu1 %vm2405_vm0, %v2404_v0 }
 0x385   : > { %1954 = vmatmul.mubr.msk.bf16.vlgmr.msra.gmra.mxu0 %vm718_vm2, %v979_v11 }
 0x386   : > { %1965 = vmatprep.mubr.msk.bf16.mxu0 %vm2405_vm0, %v2404_v0 }
 0x439   : > { %v2813_v12 = vpop.f32.mrf.mxu1 }
 0x43b   : > { %v1937_v13 = vpop.f32.mrf.mxu1 }
 0x43d   : > { %v879_v14 = vpop.f32.mrf.mxu1  ;;  %v2815_v15 = vpop.f32.mrf.mxu0 }
 0x43f   : > { %v1938_v17 = vpop.f32.mrf.mxu1  ;;  %v1943_v18 = vpop.f32.mrf.mxu0 }
 0x441   : > { %v925_v19 = vpop.f32.mrf.mxu0  ;;  %v972_v20 = vpop.f32.mrf.mxu1 }
 0x442   : > { %v1028_v21 = vsel %vm718_vm2, %v972_v20, -inf }
 0x443   : > { %1029 = vmax.xlane.f32.xlu0 %v1028_v21  ;;  %v1944_v22 = vpop.f32.mrf.mxu0  ;;  %v1949_v23 = vpop.f32.mrf.mxu1 }
 0x445   : > { %v975_v25 = vpop.f32.mrf.mxu1  ;;  %v1022_v27 = vpop.f32.mrf.mxu0 }
 0x446   : > { %v1031_v28 = vsel %vm718_vm2, %v1022_v27, -inf }
 0x447   : > { %v1950_v30 = vpop.f32.mrf.mxu1  ;;  %1032 = vmax.xlane.f32.xlu1 %v1031_v28  ;;  %v1955_v31 = vpop.f32.mrf.mxu0 }
 0x449   : > { %v1025_v32 = vpop.f32.mrf.mxu0 }
 0x44b   : > { %v1956_v33 = vpop.f32.mrf.mxu0 }
 0x458   : > { %1100 = vrot.lane.b32.xlu1 %v2779_v38, %s2406_s1 }
 0x45c   : > { %1150 = vrot.lane.b32.xlu1 %v2750_v16, %s2407_s26 }
 0x460   : > { %1200 = vrot.lane.b32.xlu1 %v2754_v24, %s2407_s26 }
 0x464   : > { %1198 = vrot.lane.b32.xlu1 %v2768_v29, %s2407_s26 }
 0x4cc   : > { %v1030_v34 = vpop.xlane.xlu0 %1029 }
 0x4cd   : > { %v1034_v35 = vsub.f32 %v972_v20, %v1030_v34 }
 0x4cf   : > { %v1036_v36 = vmul.f32 1.442695, %v1034_v35 }
 0x4d0   : > { %v1033_v39 = vpop.xlane.xlu1 %1032 }
 0x4d1   : > { %2132 = vpow2.f32 %v1036_v36  ;;  %v1035_v40 = vsub.f32 %v1022_v27, %v1033_v39 }
 0x4d3   : > { %v1038_v41 = vmul.f32 1.442695, %v1035_v40 }
 0x4d4   : > { %v1101_v42 = vpop.permute.xlu1 %1100 }
 0x4d5   : > { %2134 = vpow2.f32 %v1038_v41  ;;  %v1106_v43 = vsel %vm838_vm3, %v1101_v42, 0 }
 0x4d6   : > { %1964 = vmatpush3.bf16.msra.mxu0 %v1106_v43 }
 0x4d7   : > { %1975 = vmatprep.subr.bf16.mxu0 %v2404_v0 }
 0x4d8   : > { %v1151_v53 = vpop.permute.xlu1 %1150 }
 0x4d9   : > { %v1156_v57 = vsel %vm718_vm2, %v1151_v53, 0 }
 0x4dc   : > { %v1201_v59 = vpop.permute.xlu1 %1200 }
 0x4dd   : > { %v1206_v61 = vsel %vm718_vm2, %v1201_v59, 0 }
 0x4de   : > { %v2133_v44 = vpop.eup %2132 }
 0x4df   : > { %v1040_v45 = vsel %vm718_vm2, %v2133_v44, 0.0 }
 0x4e0   : > { %1041 = vadd.xlane.f32.xlu0 %v1040_v45  ;;  %v1199_v63 = vpop.permute.xlu1 %1198 }
 0x4e2   : > { %v2135_v46 = vpop.eup %2134 }
 0x4e3   : > { %v1043_v47 = vsel %vm718_vm2, %v2135_v46, 0.0 }
 0x4e4   : > { %1044 = vadd.xlane.f32.xlu0 %v1043_v47 }
 0x4fa   : > { %1052 = vrot.lane.b32.xlu0 %v2777_v37, %s2406_s1 }
 0x4fe   : > { %1148 = vrot.lane.b32.xlu0 %v2757_v26, %s2407_s26 }
 0x569   : > { %v1042_v48 = vpop.xlane.xlu0 %1041 }
 0x56a   : > { %2136 = vrcp.f32 %v1042_v48 }
 0x56d   : > { %v1045_v49 = vpop.xlane.xlu0 %1044 }
 0x56e   : > { %2138 = vrcp.f32 %v1045_v49 }
 0x571   : > { %v1053_v50 = vpop.permute.xlu0 %1052 }
 0x572   : > { %v1058_v51 = vsel %vm838_vm3, %v1053_v50, 0 }
 0x573   : > { %1958 = vmatpush3.bf16.msra.mxu1 %v1058_v51 }
 0x574   : > { %1969 = vmatprep.subr.bf16.mxu1 %v2404_v0 }
 0x575   : > { %v1149_v62 = vpop.permute.xlu0 %1148 }
 0x577   : > { %v2137_v52 = vpop.eup %2136 }
 0x578   : > { %v1048_v54 = vmul.f32 %v2137_v52, %v2133_v44 }
 0x57a   : > { %v1050_v55 = vpack.c.bf16 %v1048_v54, %v1048_v54 }
 0x57b   : > { %v2139_v56 = vpop.eup %2138 }
 0x57c   : > { %1960 = vmatmul.mubr.msk.bf16.vlgmr.msra.gmra.mxu1 %vm718_vm2, %v1050_v55  ;;  %v1049_v58 = vmul.f32 %v2139_v56, %v2135_v46 }
 0x57d   : > { %1970 = vmatpush3.bf16.xpose.msra.mxu1 %v1156_v57  ;;  %1971 = vmatprep.mubr.msk.bf16.mxu1 %vm2405_vm0, %v2404_v0 }
 0x57e   : > { %v1051_v60 = vpack.c.bf16 %v1049_v58, %v1049_v58  ;;  %1981 = vmatprep.subr.bf16.mxu1 %v2404_v0 }
 0x580   : > { %1966 = vmatmul.mubr.msk.bf16.vlgmr.msra.gmra.mxu0 %vm718_vm2, %v1051_v60 }
 0x581   : > { %1976 = vmatpush3.bf16.xpose.msra.mxu0 %v1206_v61  ;;  %1977 = vmatprep.mubr.msk.bf16.mxu0 %vm2405_vm0, %v2404_v0 }
 0x582   : > { %1987 = vmatprep.subr.bf16.mxu0 %v2404_v0 }
 0x584   : > { %1972 = vmatmul.mubr.msk.bf16.vlgmr.msra.gmra.mxu1 %vm718_vm2, %v1149_v62 }
 0x585   : > { %1983 = vmatprep.mubr.msk.bf16.mxu1 %vm2405_vm0, %v2404_v0 }
 0x588   : > { %1978 = vmatmul.mubr.msk.bf16.vlgmr.msra.gmra.mxu0 %vm718_vm2, %v1199_v63 }
 0x589   : > { %1989 = vmatprep.mubr.msk.bf16.mxu0 %vm2405_vm0, %v2404_v0 }
 0x63c   : > { %v2853_v1 = vpop.f32.mrf.mxu1 }
 0x63e   : > { %v1961_v2 = vpop.f32.mrf.mxu1 }
 0x640   : > { %v1097_v3 = vpop.f32.mrf.mxu1  ;;  %v2855_v4 = vpop.f32.mrf.mxu0 }
 0x642   : > { %v1962_v5 = vpop.f32.mrf.mxu1  ;;  %v1967_v6 = vpop.f32.mrf.mxu0 }
 0x644   : > { %v1145_v7 = vpop.f32.mrf.mxu0  ;;  %v1192_v8 = vpop.f32.mrf.mxu1 }
 0x645   : > { %v1248_v9 = vsel %vm718_vm2, %v1192_v8, -inf }
 0x646   : > { %1249 = vmax.xlane.f32.xlu0 %v1248_v9  ;;  %v1968_v10 = vpop.f32.mrf.mxu0  ;;  %v1973_v11 = vpop.f32.mrf.mxu1 }
 0x648   : > { %v1195_v13 = vpop.f32.mrf.mxu1  ;;  %v1242_v14 = vpop.f32.mrf.mxu0 }
 0x649   : > { %v1251_v17 = vsel %vm718_vm2, %v1242_v14, -inf }
 0x64a   : > { %v1974_v18 = vpop.f32.mrf.mxu1  ;;  %1252 = vmax.xlane.f32.xlu1 %v1251_v17  ;;  %v1979_v19 = vpop.f32.mrf.mxu0 }
 0x64c   : > { %v1245_v20 = vpop.f32.mrf.mxu0 }
 0x64e   : > { %v1980_v21 = vpop.f32.mrf.mxu0 }
 0x65b   : > { %1320 = vrot.lane.b32.xlu1 %v2779_v38, %s2407_s26 }
 0x65f   : > { %1370 = vrot.lane.b32.xlu1 %v2750_v16, %s2408_s29 }
 0x663   : > { %1420 = vrot.lane.b32.xlu1 %v2754_v24, %s2408_s29 }
 0x667   : > { %1418 = vrot.lane.b32.xlu1 %v2768_v29, %s2408_s29 }
 0x6cf   : > { %v1250_v22 = vpop.xlane.xlu0 %1249 }
 0x6d0   : > { %v1254_v23 = vsub.f32 %v1192_v8, %v1250_v22 }
 0x6d2   : > { %v1256_v25 = vmul.f32 1.442695, %v1254_v23 }
 0x6d3   : > { %v1253_v27 = vpop.xlane.xlu1 %1252 }
 0x6d4   : > { %2140 = vpow2.f32 %v1256_v25  ;;  %v1255_v28 = vsub.f32 %v1242_v14, %v1253_v27 }
 0x6d6   : > { %v1258_v30 = vmul.f32 1.442695, %v1255_v28 }
 0x6d7   : > { %v1321_v31 = vpop.permute.xlu1 %1320 }
 0x6d8   : > { %2142 = vpow2.f32 %v1258_v30  ;;  %v1326_v32 = vsel %vm838_vm3, %v1321_v31, 0 }
 0x6d9   : > { %1988 = vmatpush3.bf16.msra.mxu0 %v1326_v32 }
 0x6da   : > { %1999 = vmatprep.subr.bf16.mxu0 %v2404_v0 }
 0x6db   : > { %v1371_v41 = vpop.permute.xlu1 %1370 }
 0x6dc   : > { %v1376_v45 = vsel %vm718_vm2, %v1371_v41, 0 }
 0x6df   : > { %v1421_v46 = vpop.permute.xlu1 %1420 }
 0x6e0   : > { %v1426_v48 = vsel %vm718_vm2, %v1421_v46, 0 }
 0x6e1   : > { %v2141_v16 = vpop.eup %2140 }
 0x6e2   : > { %v1260_v24 = vsel %vm718_vm2, %v2141_v16, 0.0 }
 0x6e3   : > { %1261 = vadd.xlane.f32.xlu0 %v1260_v24  ;;  %v1419_v50 = vpop.permute.xlu1 %1418 }
 0x6e5   : > { %v2143_v33 = vpop.eup %2142 }
 0x6e6   : > { %v1263_v29 = vsel %vm718_vm2, %v2143_v33, 0.0 }
 0x6e7   : > { %1264 = vadd.xlane.f32.xlu0 %v1263_v29 }
 0x6fd   : > { %1272 = vrot.lane.b32.xlu0 %v2777_v37, %s2407_s26 }
 0x701   : > { %1368 = vrot.lane.b32.xlu0 %v2757_v26, %s2408_s29 }
 0x76c   : > { %v1262_v34 = vpop.xlane.xlu0 %1261 }
 0x76d   : > { %2144 = vrcp.f32 %v1262_v34 }
 0x770   : > { %v1265_v35 = vpop.xlane.xlu0 %1264 }
 0x771   : > { %2146 = vrcp.f32 %v1265_v35 }
 0x774   : > { %v1273_v36 = vpop.permute.xlu0 %1272 }
 0x775   : > { %v1278_v39 = vsel %vm838_vm3, %v1273_v36, 0 }
 0x776   : > { %1982 = vmatpush3.bf16.msra.mxu1 %v1278_v39 }
 0x777   : > { %1993 = vmatprep.subr.bf16.mxu1 %v2404_v0 }
 0x778   : > { %v1369_v49 = vpop.permute.xlu0 %1368 }
 0x77a   : > { %v2145_v40 = vpop.eup %2144 }
 0x77b   : > { %v1268_v42 = vmul.f32 %v2145_v40, %v2141_v16 }
 0x77d   : > { %v1270_v43 = vpack.c.bf16 %v1268_v42, %v1268_v42 }
 0x77e   : > { %v2147_v44 = vpop.eup %2146 }
 0x77f   : > { %1984 = vmatmul.mubr.msk.bf16.vlgmr.msra.gmra.mxu1 %vm718_vm2, %v1270_v43  ;;  %v1269_v26 = vmul.f32 %v2147_v44, %v2143_v33 }
 0x780   : > { %1994 = vmatpush3.bf16.xpose.msra.mxu1 %v1376_v45  ;;  %1995 = vmatprep.mubr.msk.bf16.mxu1 %vm2405_vm0, %v2404_v0 }
 0x781   : > { %v1271_v47 = vpack.c.bf16 %v1269_v26, %v1269_v26  ;;  %2005 = vmatprep.subr.bf16.mxu1 %v2404_v0 }
 0x783   : > { %1990 = vmatmul.mubr.msk.bf16.vlgmr.msra.gmra.mxu0 %vm718_vm2, %v1271_v47 }
 0x784   : > { %2000 = vmatpush3.bf16.xpose.msra.mxu0 %v1426_v48  ;;  %2001 = vmatprep.mubr.msk.bf16.mxu0 %vm2405_vm0, %v2404_v0 }
 0x785   : > { %2011 = vmatprep.subr.bf16.mxu0 %v2404_v0 }
 0x787   : > { %1996 = vmatmul.mubr.msk.bf16.vlgmr.msra.gmra.mxu1 %vm718_vm2, %v1369_v49 }
 0x788   : > { %2007 = vmatprep.mubr.msk.bf16.mxu1 %vm2405_vm0, %v2404_v0 }
 0x78b   : > { %2002 = vmatmul.mubr.msk.bf16.vlgmr.msra.gmra.mxu0 %vm718_vm2, %v1419_v50 }
 0x78c   : > { %2013 = vmatprep.mubr.msk.bf16.mxu0 %vm2405_vm0, %v2404_v0 }
 0x83f   : > { %v1314_v51 = vpop.f32.mrf.mxu1 }
 0x841   : > { %v1985_v52 = vpop.f32.mrf.mxu1 }
 0x843   : > { %v1317_v53 = vpop.f32.mrf.mxu1  ;;  %v1362_v54 = vpop.f32.mrf.mxu0 }
 0x845   : > { %v1986_v55 = vpop.f32.mrf.mxu1  ;;  %v1991_v56 = vpop.f32.mrf.mxu0 }
 0x847   : > { %v1365_v57 = vpop.f32.mrf.mxu0  ;;  %v1412_v58 = vpop.f32.mrf.mxu1 }
 0x848   : > { %v1468_v59 = vsel %vm718_vm2, %v1412_v58, -inf }
 0x849   : > { %1469 = vmax.xlane.f32.xlu0 %v1468_v59  ;;  %v1992_v60 = vpop.f32.mrf.mxu0  ;;  %v1997_v61 = vpop.f32.mrf.mxu1 }
 0x84b   : > { %v1415_v62 = vpop.f32.mrf.mxu1  ;;  %v1462_v63 = vpop.f32.mrf.mxu0 }
 0x84c   : > { %v1471_v2 = vsel %vm718_vm2, %v1462_v63, -inf }
 0x84d   : > { %v1998_v3 = vpop.f32.mrf.mxu1  ;;  %1472 = vmax.xlane.f32.xlu1 %v1471_v2  ;;  %v2003_v0 = vpop.f32.mrf.mxu0 }
 0x84f   : > { %v1465_v5 = vpop.f32.mrf.mxu0 }
 0x851   : > { %v2004_v6 = vpop.f32.mrf.mxu0 }
 0x85e   : > { %1540 = vrot.lane.b32.xlu1 %v2779_v38, %s2408_s29 }
 0x862   : > { %1590 = vrot.lane.b32.xlu1 %v2853_v1, %s2409_s17 }
 0x866   : > { %1592 = vrot.lane.b32.xlu1 %v2855_v4, %s2409_s17 }
 0x86a   : > { %1600 = vrot.lane.b32.xlu1 %v1362_v54, %s2410_s4 }
 0x8d2   : > { %v1470_v7 = vpop.xlane.xlu0 %1469 }
 0x8d3   : > { %v1474_v8 = vsub.f32 %v1412_v58, %v1470_v7 }
 0x8d5   : > { %v1476_v9 = vmul.f32 1.442695, %v1474_v8 }
 0x8d6   : > { %v1473_v10 = vpop.xlane.xlu1 %1472 }
 0x8d7   : > { %2148 = vpow2.f32 %v1476_v9  ;;  %v1475_v11 = vsub.f32 %v1462_v63, %v1473_v10 }
 0x8d9   : > { %v1478_v13 = vmul.f32 1.442695, %v1475_v11 }
 0x8da   : > { %v1541_v14 = vpop.permute.xlu1 %1540 }
 0x8db   : > { %2150 = vpow2.f32 %v1478_v13  ;;  %v1546_v38 = vsel %vm838_vm3, %v1541_v14, 0 }
 0x8dc   : > { %2012 = vmatpush3.bf16.msra.mxu0 %v1546_v38 }
 0x8de   : > { %v1591_v36 = vpop.permute.xlu1 %1590 }
 0x8df   : > { %v1612_v41 = vsel %vm718_vm2, %v2813_v12, %v1591_v36 }
 0x8e2   : > { %v1593_v39 = vpop.permute.xlu1 %1592 }
 0x8e3   : > { %v1613_v26 = vsel %vm718_vm2, %v2815_v15, %v1593_v39 }
 0x8e4   : > { %v2149_v17 = vpop.eup %2148 }
 0x8e5   : > { %v1480_v1 = vsel %vm718_vm2, %v2149_v17, 0.0 }
 0x8e6   : > { %1481 = vadd.xlane.f32.xlu0 %v1480_v1  ;;  %v1601_v42 = vpop.permute.xlu1 %1600 }
 0x8e7   : > { %v1616_v12 = vsel %vm1614_vm5, %v1613_v26, %v1601_v42 }
 0x8e8   : > { %v2151_v18 = vpop.eup %2150 }
 0x8e9   : > { %v1483_v4 = vsel %vm718_vm2, %v2151_v18, 0.0 }
 0x8ea   : > { %1484 = vadd.xlane.f32.xlu0 %v1483_v4 }
 0x900   : > { %1492 = vrot.lane.b32.xlu0 %v2777_v37, %s2408_s29 }
 0x904   : > { %1598 = vrot.lane.b32.xlu0 %v1314_v51, %s2410_s4 }
 0x96f   : > { %v1482_v19 = vpop.xlane.xlu0 %1481 }
 0x970   : > { %2152 = vrcp.f32 %v1482_v19 }
 0x973   : > { %v1485_v20 = vpop.xlane.xlu0 %1484 }
 0x974   : > { %2154 = vrcp.f32 %v1485_v20 }
 0x977   : > { %v1493_v21 = vpop.permute.xlu0 %1492 }
 0x978   : > { %v1498_v22 = vsel %vm838_vm3, %v1493_v21, 0 }
 0x979   : > { %2006 = vmatpush3.bf16.msra.mxu1 %v1498_v22 }
 0x97b   : > { %v1599_v40 = vpop.permute.xlu0 %1598 }
 0x97c   : > { %v1615_v43 = vsel %vm1614_vm5, %v1612_v41, %v1599_v40 }
 0x97d   : > { %v2153_v23 = vpop.eup %2152 }
 0x97e   : > { %v1488_v25 = vmul.f32 %v2153_v23, %v2149_v17 }
 0x980   : > { %v1490_v27 = vpack.c.bf16 %v1488_v25, %v1488_v25 }
 0x981   : > { %v2155_v28 = vpop.eup %2154 }
 0x982   : > { %2008 = vmatmul.mubr.msk.bf16.vlgmr.msra.gmra.mxu1 %vm718_vm2, %v1490_v27  ;;  %v1489_v30 = vmul.f32 %v2155_v28, %v2151_v18 }
 0x984   : > { %v1491_v31 = vpack.c.bf16 %v1489_v30, %v1489_v30 }
 0x986   : > { %2014 = vmatmul.mubr.msk.bf16.vlgmr.msra.gmra.mxu0 %vm718_vm2, %v1491_v31 }
 0xa42   : > { %v1534_v37 = vpop.f32.mrf.mxu1 }
 0xa43   : > { %1606 = vrot.lane.b32.xlu0 %v1534_v37, %s2411_s28 }
 0xa44   : > { %v2009_v32 = vpop.f32.mrf.mxu1 }
 0xa46   : > { %v1537_v16 = vpop.f32.mrf.mxu1  ;;  %v1582_v24 = vpop.f32.mrf.mxu0 }
 0xa47   : > { %1608 = vrot.lane.b32.xlu1 %v1582_v24, %s2411_s28 }
 0xa48   : > { %v2010_v33 = vpop.f32.mrf.mxu1  ;;  %v2015_v29 = vpop.f32.mrf.mxu0 }
 0xa4a   : > { %v1585_v34 = vpop.f32.mrf.mxu0 }
 0xa4c   : > { %v2016_v35 = vpop.f32.mrf.mxu0 }
 0xab5   : > { %v1607_v44 = vpop.permute.xlu0 %1606 }
 0xab6   : > { %v1618_v45 = vsel %vm1617_vm4, %v1615_v43, %v1607_v44 }
 0xab7   : > { %1620 = vst.msk [vmem:[%s471_s30] sm:$0xff] %vm511_vm1, %v1618_v45 }
 0xab9   : > { %v1609_v46 = vpop.permute.xlu1 %1608 }
 0xaba   : > { %v1619_v47 = vsel %vm1617_vm4, %v1616_v12, %v1609_v46 }
 0xabb   : > { %1621 = vst.msk [vmem:[%s471_s30 + $0x8] sm:$0xff] %vm511_vm1, %v1619_v47 }
 0xabc   : > { %2331 = shalt.err (!%p2328_p10)
}
 0xabd   : > { %s2332_s9 = scalar_lea.hbm %s2922_s3, 256  ;;  %s2336_s12 = scalar_lea.hbm %s3030_s19, 512 }
 0xabe   : > { %p2333_p11 = scmp.ne.s32.totalorder %s2922_s3, %s2332_s9  ;;  %p2337_p5 = scmp.lt.s32.totalorder %s2922_s3, %s3030_s19 }
 0xabf   : > { %p2338_p12 = scmp.lt.s32.totalorder %s2336_s12, %s2332_s9 }
 0xac0   : > { %p2334_p1 = pnand %p2333_p11, %p3031_p2 }
 0xac1   : > { %p2339_p0 = por %p2338_p12, %p2337_p5 }
 0xac2   : > { %p2335_p4 = pneg %p2334_p1 }
 0xac4   : > { %p2340_p13 = pnand %p2339_p0, %p2335_p4 }
 0xac6   : > { %2343 = shalt.err (!%p2340_p13)
}
 0xac7   : > { %s2413_s4 = smov 128  }
 0xac8   : > { %2035 = dma.vmem_to_hbm [thread:$0]  (%p3031_p2), %s2917_s18, 256, %s2922_s3, %s1623_s13, %s2413_s4, %s2413_s4, %s2409_s17  }
 0xac9 PF: > { %s3032_s28 = sld [smem:[#allocation19_spill]] }
 0xaca   : > { %s3033_s15 = sld [smem:[#allocation23_spill]] }
 0xacb   : > { %s3034_s30 = sld [smem:[#allocation20_spill]] }
 0xacf   : > { %s1651_s24 = sand.u32 1, %s3032_s28  }
 0xad0   : > { %p3035_p7 = scmp.ne.s32.totalorder %s3033_s15, 0  ;;  %s1652_s27 = scalar_lea.sflag [#allocation4], %s1651_s24 }
 0xad1   : > { %p3036_p3 = scmp.ge.s32.totalorder %s3034_s30, 2 }
 0xad3   : > { %p2058_p6 = pnand %p3036_p3, %p3035_p7 }
 0xad5   : > { %p2059_p8 = pneg %p2058_p6 }
 0xad7   : > { %2377 = dma.done.wait (%p2059_p8), %s1652_s27, 256  }
 0xad8   : > { %2379 = vsyncadd (%p2059_p8), %s1652_s27, 4294967040  ;;  %s3037_s12 = sld [smem:[#allocation21_spill]]  ;;  %s3039_s30 = smov %s2386_s10 }
 0xad9   : > { %s3038_s21 = sld [smem:[#allocation22_spill]]  ;;  %s3040_s10 = smov %s2390_s11 }
 0xade   : > { %p27_p9 = scmp.ge.s32.totalorder %s3037_s12, 4  }
 0xadf   : > { %s3041_s11 = smov %s3038_s21 }
 0xae0   :  { %29 = sbr.rel (!%p27_p9) target bundleno = 15 (0xf), region = 137 }
 0xae5   :  { %1657 = vsyncpa [#allocation3], 1 }
 0xae6   :  { %1659 = vsyncpa [#allocation3 + $0x1], 1 }
 0xae7   :  { %1660 = vsyncpa [#allocation6], 1 }
 0xae8   :  { %1662 = vsyncpa [#allocation6 + $0x1], 1 }
 0xae9   :  { %1663 = vsyncpa [#allocation9], 1 }
 0xaea   :  { %1664 = vsyncpa [#allocation12], 1 }
 0xaeb   :  { %1665 = vsyncpa [#allocation4], 1 }
 0xaec   :  { %1667 = vsyncpa [#allocation4 + $0x1], 1 }

</bundles_post_ra>
